<compile_context>
chip_gen: v7x
topology: tpu7x:2x2x1
jax: 0.10.0
libtpu: 0.0.40
codegen_flags: <defaults>
</compile_context>

<pallas_src>
import functools

import jax
import jax.numpy as jnp
from jax.experimental import pallas as pl
from jax.experimental.pallas import tpu as pltpu


D_IN = 28 * 28          # 784 (full-array last dim for x / second-minor for w1)
HID = 512
D_OUT = 10
NOUT_PAD = 128          # lane-dense output block; slice [:, :10] outside


def mlp_kernel(x_ref, w1_ref, b1_ref, w2_ref, b2_ref, w3_ref, b3_ref, o_ref):
    # Layer 1: f32 x tile cast to bf16 in-kernel (VPU work hidden under MXU),
    # bf16 x bf16 matmul with f32 accumulation; bias + ReLU in f32.
    x = x_ref[...].astype(jnp.bfloat16)
    h1 = jnp.dot(x, w1_ref[...], preferred_element_type=jnp.float32)
    h1 = jnp.maximum(h1 + b1_ref[...], 0.0)
    # Layer 2
    h2 = jnp.dot(h1.astype(jnp.bfloat16), w2_ref[...],
                 preferred_element_type=jnp.float32)
    h2 = jnp.maximum(h2 + b2_ref[...], 0.0)
    # Layer 3 (output padded to 128 lanes; padded columns stay exactly zero)
    h3 = jnp.dot(h2.astype(jnp.bfloat16), w3_ref[...],
                 preferred_element_type=jnp.float32)
    o_ref[...] = jnp.maximum(h3 + b3_ref[...], 0.0)


def _choose_tm(n):
    """Batch tile size.

    Goals: large tiles to amortize per-step pipeline overhead, at least two
    grid steps when possible (feeds both v7x TensorCores via the "parallel"
    grid axis), and no more than half a tile wasted on batch padding.
    """
    if n <= 128:
        return max(8, ((n + 7) // 8) * 8)           # single 8-aligned tile
    for tm in (512, 256, 128):
        n_pad = ((n + tm - 1) // tm) * tm
        if n_pad // tm >= 2 and (n_pad - n) * 2 <= tm:
            return tm
    return 128


def prepare_params(params):
    """One-time kernel-ready parameter prep (bf16 weights, padded layer 3).

    Do this once and reuse; it keeps the per-forward-call HBM traffic down to
    the weights themselves instead of re-casting f32 masters every call.
    """
    w1, b1, w2, b2, w3, b3 = params
    w1_bf = w1.astype(jnp.bfloat16)                                   # (784, 512)
    w2_bf = w2.astype(jnp.bfloat16)                                   # (512, 512)
    w3_p = jnp.zeros((HID, NOUT_PAD), jnp.bfloat16).at[:, :D_OUT].set(
        w3.astype(jnp.bfloat16))                                      # (512, 128)
    b3_p = jnp.zeros((1, NOUT_PAD), jnp.float32).at[:, :D_OUT].set(b3)
    return (w1_bf, b1, w2_bf, b2, w3_p, b3_p)


@functools.partial(jax.jit, donate_argnums=())
def net_forward(x_nchw, kparams):
    """x_nchw: (N, 1, 28, 28) float32 -> (N, 10) float32 logits (post-ReLU)."""
    w1_bf, b1, w2_bf, b2, w3_p, b3_p = kparams
    n = x_nchw.shape[0]
    x_flat = x_nchw.reshape(n, D_IN)                    # nn.Flatten(), f32

    tm = _choose_tm(n)
    n_pad = pl.cdiv(n, tm) * tm
    if n_pad != n:
        x_flat = jnp.pad(x_flat, ((0, n_pad - n), (0, 0)))

    # Resident (constant-index) weights/biases: single VMEM buffer is enough.
    def resident(shape):
        return pl.BlockSpec(shape, lambda i: (0,) * len(shape),
                            pipeline_mode=pl.Buffered(1))

    out = pl.pallas_call(
        mlp_kernel,
        out_shape=jax.ShapeDtypeStruct((n_pad, NOUT_PAD), jnp.float32),
        grid=(n_pad // tm,),
        in_specs=[
            pl.BlockSpec((tm, D_IN), lambda i: (i, 0)),      # x tile (f32, pipelined)
            resident((D_IN, HID)), resident((1, HID)),       # w1, b1 (VMEM resident)
            resident((HID, HID)), resident((1, HID)),        # w2, b2
            resident((HID, NOUT_PAD)), resident((1, NOUT_PAD)),  # w3, b3
        ],
        out_specs=pl.BlockSpec((tm, NOUT_PAD), lambda i: (i, 0)),
        compiler_params=pltpu.CompilerParams(
            dimension_semantics=("parallel",),   # shard batch tiles across TCs
            vmem_limit_bytes=32 << 20,           # plenty even at tm=512
        ),
    )(x_flat, w1_bf, b1, w2_bf, b2, w3_p, b3_p)

    return out[:n, :D_OUT]


def init_params(key):
    """PyTorch-default-style init: U(-1/sqrt(fan_in), 1/sqrt(fan_in)), f32 masters."""
    dims = [(D_IN, HID), (HID, HID), (HID, D_OUT)]
    params = []
    for fan_in, fan_out in dims:
        kw, kb, key = jax.random.split(key, 3)
        bound = 1.0 / jnp.sqrt(float(fan_in))
        w = jax.random.uniform(kw, (fan_in, fan_out), jnp.float32, -bound, bound)
        b = jax.random.uniform(kb, (1, fan_out), jnp.float32, -bound, bound)
        params += [w, b]
    return tuple(params)


def reference_forward_f32(x_nchw, params):
    w1, b1, w2, b2, w3, b3 = params
    x = x_nchw.reshape(x_nchw.shape[0], -1)
    h = jnp.maximum(x @ w1 + b1, 0.0)
    h = jnp.maximum(h @ w2 + b2, 0.0)
    return jnp.maximum(h @ w3 + b3, 0.0)


def reference_forward_bf16(x_nchw, params):
    """Same bf16-input / f32-accumulate math as the kernel, in plain JAX."""
    w1, b1, w2, b2, w3, b3 = params
    x = x_nchw.reshape(x_nchw.shape[0], -1).astype(jnp.bfloat16)
    bf = lambda a: a.astype(jnp.bfloat16)
    h = jnp.maximum(jnp.dot(x, bf(w1), preferred_element_type=jnp.float32) + b1, 0.0)
    h = jnp.maximum(jnp.dot(bf(h), bf(w2), preferred_element_type=jnp.float32) + b2, 0.0)
    h = jnp.maximum(jnp.dot(bf(h), bf(w3), preferred_element_type=jnp.float32) + b3, 0.0)
    return h


if __name__ == "__main__":
    key = jax.random.PRNGKey(0)
    kx, kx2, kp = jax.random.split(key, 3)
    params = init_params(kp)
    kparams = prepare_params(params)      # one-time bf16/padded weight prep

    # Small MNIST-shaped batch, NCHW like PyTorch.
    x = jax.random.normal(kx, (8, 1, 28, 28), jnp.float32)
    out = jax.block_until_ready(net_forward(x, kparams))
    assert out.shape == (8, 10)
    ref_bf16 = reference_forward_bf16(x, params)
    ref_f32 = reference_forward_f32(x, params)
    assert jnp.allclose(out, ref_bf16, atol=5e-3, rtol=5e-3), "mismatch vs bf16 ref"
    assert jnp.allclose(out, ref_f32, atol=5e-2, rtol=5e-2), "mismatch vs f32 ref"

    # Medium batch exercising the multi-tile grid (tm=128 -> 2 parallel steps)
    # and batch padding (200 -> 256).
    x2 = jax.random.normal(kx2, (200, 1, 28, 28), jnp.float32)
    out2 = jax.block_until_ready(net_forward(x2, kparams))
    assert out2.shape == (200, 10)
    ref2 = reference_forward_bf16(x2, params)
    assert jnp.allclose(out2, ref2, atol=5e-3, rtol=5e-3), "mismatch vs bf16 ref (N=200)"

    print("KERNEL_OK")
</pallas_src>

<mosaic_0001>
module attributes {stable_mosaic.version = 11 : i64} {
  func.func @mlp_kernel(%arg0: i32, %arg1: memref<8x784xf32, #tpu.memory_space<vmem>>, %arg2: memref<784x512xbf16, #tpu.memory_space<vmem>>, %arg3: memref<1x512xf32, #tpu.memory_space<vmem>>, %arg4: memref<512x512xbf16, #tpu.memory_space<vmem>>, %arg5: memref<1x512xf32, #tpu.memory_space<vmem>>, %arg6: memref<512x128xbf16, #tpu.memory_space<vmem>>, %arg7: memref<1x128xf32, #tpu.memory_space<vmem>>, %arg8: memref<8x128xf32, #tpu.memory_space<vmem>>) attributes {dimension_semantics = [#tpu.dimension_semantics<parallel>], iteration_bounds = array<i64: 1>, scalar_prefetch = 0 : i64, scratch_operands = 0 : i64, tpu.core_type = #tpu.core_type<tc>, window_params = [{transform_indices = @transform_0, window_bounds = array<i64: 8, 784>}, {pipeline_mode = #tpu.pipeline_mode<synchronous>, transform_indices = @transform_1, window_bounds = array<i64: 784, 512>}, {pipeline_mode = #tpu.pipeline_mode<synchronous>, transform_indices = @transform_2, window_bounds = array<i64: 1, 512>}, {pipeline_mode = #tpu.pipeline_mode<synchronous>, transform_indices = @transform_3, window_bounds = array<i64: 512, 512>}, {pipeline_mode = #tpu.pipeline_mode<synchronous>, transform_indices = @transform_4, window_bounds = array<i64: 1, 512>}, {pipeline_mode = #tpu.pipeline_mode<synchronous>, transform_indices = @transform_5, window_bounds = array<i64: 512, 128>}, {pipeline_mode = #tpu.pipeline_mode<synchronous>, transform_indices = @transform_6, window_bounds = array<i64: 1, 128>}, {transform_indices = @transform_7, window_bounds = array<i64: 8, 128>}]} {
    %c0 = arith.constant 0 : index
    %c0_0 = arith.constant 0 : index
    %0 = vector.load %arg1[%c0, %c0_0] : memref<8x784xf32, #tpu.memory_space<vmem>>, vector<8x784xf32>
    %1 = arith.truncf %0 : vector<8x784xf32> to vector<8x784xbf16>
    %c0_1 = arith.constant 0 : index
    %c0_2 = arith.constant 0 : index
    %2 = vector.load %arg2[%c0_1, %c0_2] : memref<784x512xbf16, #tpu.memory_space<vmem>>, vector<784x512xbf16>
    %cst = arith.constant dense<0.000000e+00> : vector<8x512xf32>
    %3 = tpu.matmul %1, %2, %cst {dimension_numbers = #tpu.dot_dimension_numbers<[1], [0], [0], [1], [0, 0, 1, 1], [], []>} : vector<8x784xbf16>, vector<784x512xbf16>, vector<8x512xf32> -> vector<8x512xf32>
    %c0_3 = arith.constant 0 : index
    %c0_4 = arith.constant 0 : index
    %4 = vector.load %arg3[%c0_3, %c0_4] : memref<1x512xf32, #tpu.memory_space<vmem>>, vector<1x512xf32>
    %5 = vector.broadcast %4 : vector<1x512xf32> to vector<8x512xf32>
    %6 = arith.addf %3, %5 : vector<8x512xf32>
    %cst_5 = arith.constant 0.000000e+00 : f32
    %7 = vector.broadcast %cst_5 : f32 to vector<8x512xf32>
    %8 = arith.maximumf %6, %7 : vector<8x512xf32>
    %9 = arith.truncf %8 : vector<8x512xf32> to vector<8x512xbf16>
    %c0_6 = arith.constant 0 : index
    %c0_7 = arith.constant 0 : index
    %10 = vector.load %arg4[%c0_6, %c0_7] : memref<512x512xbf16, #tpu.memory_space<vmem>>, vector<512x512xbf16>
    %cst_8 = arith.constant dense<0.000000e+00> : vector<8x512xf32>
    %11 = tpu.matmul %9, %10, %cst_8 {dimension_numbers = #tpu.dot_dimension_numbers<[1], [0], [0], [1], [0, 0, 1, 1], [], []>} : vector<8x512xbf16>, vector<512x512xbf16>, vector<8x512xf32> -> vector<8x512xf32>
    %c0_9 = arith.constant 0 : index
    %c0_10 = arith.constant 0 : index
    %12 = vector.load %arg5[%c0_9, %c0_10] : memref<1x512xf32, #tpu.memory_space<vmem>>, vector<1x512xf32>
    %13 = vector.broadcast %12 : vector<1x512xf32> to vector<8x512xf32>
    %14 = arith.addf %11, %13 : vector<8x512xf32>
    %cst_11 = arith.constant 0.000000e+00 : f32
    %15 = vector.broadcast %cst_11 : f32 to vector<8x512xf32>
    %16 = arith.maximumf %14, %15 : vector<8x512xf32>
    %17 = arith.truncf %16 : vector<8x512xf32> to vector<8x512xbf16>
    %c0_12 = arith.constant 0 : index
    %c0_13 = arith.constant 0 : index
    %18 = vector.load %arg6[%c0_12, %c0_13] : memref<512x128xbf16, #tpu.memory_space<vmem>>, vector<512x128xbf16>
    %cst_14 = arith.constant dense<0.000000e+00> : vector<8x128xf32>
    %19 = tpu.matmul %17, %18, %cst_14 {dimension_numbers = #tpu.dot_dimension_numbers<[1], [0], [0], [1], [0, 0, 1, 1], [], []>} : vector<8x512xbf16>, vector<512x128xbf16>, vector<8x128xf32> -> vector<8x128xf32>
    %c0_15 = arith.constant 0 : index
    %c0_16 = arith.constant 0 : index
    %20 = vector.load %arg7[%c0_15, %c0_16] : memref<1x128xf32, #tpu.memory_space<vmem>>, vector<1x128xf32>
    %21 = vector.broadcast %20 : vector<1x128xf32> to vector<8x128xf32>
    %22 = arith.addf %19, %21 : vector<8x128xf32>
    %cst_17 = arith.constant 0.000000e+00 : f32
    %23 = vector.broadcast %cst_17 : f32 to vector<8x128xf32>
    %24 = arith.maximumf %22, %23 : vector<8x128xf32>
    %c0_18 = arith.constant 0 : index
    %c0_19 = arith.constant 0 : index
    %25 = vector.load %arg8[%c0_18, %c0_19] : memref<8x128xf32, #tpu.memory_space<vmem>>, vector<8x128xf32>
    tpu.vector_store %arg8[%c0_18, %c0_19], %24 {strides = array<i32>} : memref<8x128xf32, #tpu.memory_space<vmem>>, vector<8x128xf32>,
    return
  }
  func.func @transform_0(%arg0: i32) -> (i32, i32) {
    %c0_i32 = arith.constant 0 : i32
    %c0_i32_0 = arith.constant 0 : i32
    return %arg0, %c0_i32 : i32, i32
  }
  func.func @transform_1(%arg0: i32) -> (i32, i32) {
    %c0_i32 = arith.constant 0 : i32
    %c0_i32_0 = arith.constant 0 : i32
    %c0_i32_1 = arith.constant 0 : i32
    return %c0_i32, %c0_i32_0 : i32, i32
  }
  func.func @transform_2(%arg0: i32) -> (i32, i32) {
    %c0_i32 = arith.constant 0 : i32
    %c0_i32_0 = arith.constant 0 : i32
    %c0_i32_1 = arith.constant 0 : i32
    return %c0_i32, %c0_i32_0 : i32, i32
  }
  func.func @transform_3(%arg0: i32) -> (i32, i32) {
    %c0_i32 = arith.constant 0 : i32
    %c0_i32_0 = arith.constant 0 : i32
    %c0_i32_1 = arith.constant 0 : i32
    return %c0_i32, %c0_i32_0 : i32, i32
  }
  func.func @transform_4(%arg0: i32) -> (i32, i32) {
    %c0_i32 = arith.constant 0 : i32
    %c0_i32_0 = arith.constant 0 : i32
    %c0_i32_1 = arith.constant 0 : i32
    return %c0_i32, %c0_i32_0 : i32, i32
  }
  func.func @transform_5(%arg0: i32) -> (i32, i32) {
    %c0_i32 = arith.constant 0 : i32
    %c0_i32_0 = arith.constant 0 : i32
    %c0_i32_1 = arith.constant 0 : i32
    return %c0_i32, %c0_i32_0 : i32, i32
  }
  func.func @transform_6(%arg0: i32) -> (i32, i32) {
    %c0_i32 = arith.constant 0 : i32
    %c0_i32_0 = arith.constant 0 : i32
    %c0_i32_1 = arith.constant 0 : i32
    return %c0_i32, %c0_i32_0 : i32, i32
  }
  func.func @transform_7(%arg0: i32) -> (i32, i32) {
    %c0_i32 = arith.constant 0 : i32
    %c0_i32_0 = arith.constant 0 : i32
    return %arg0, %c0_i32 : i32, i32
  }
}

</mosaic_0001>

<bundles_post_ra>
// kernel: net_forward.1
= control target key start
LH: loop header
LB: loop body
LE: loop exit
PB: predicated region body
PF: predicated region fallthrough
CT: control target
= control target key end

     0   :  { %12 = vsyncpa [#allocation3], 0  ;;  %s4209_s0 = inlined_call_operand.vmem [shape: f32[8,784], index: 0, kind: input, shape index: {}]   ;;  %s4210_s1 = inlined_call_operand.hbm [shape: bf16[784,512], index: 1, kind: input, shape index: {}]   ;;  %s4211_s2 = inlined_call_operand.vmem [shape: f32[1,512], index: 2, kind: input, shape index: {}]   ;;  %s4212_s3 = inlined_call_operand.hbm [shape: bf16[512,512], index: 3, kind: input, shape index: {}]   ;;  %s4213_s4 = inlined_call_operand.vmem [shape: f32[1,512], index: 4, kind: input, shape index: {}]   ;;  %s4214_s5 = inlined_call_operand.vmem [shape: bf16[512,128], index: 5, kind: input, shape index: {}]   ;;  %s4215_s6 = inlined_call_operand.vmem [shape: f32[1,128], index: 6, kind: input, shape index: {}]   ;;  %s4216_s7 = inlined_call_operand.hbm [shape: f32[8,128], index: 7, kind: output, shape index: {}]  }
   0x1   :  { %13 = vsyncpa [#allocation6], 0 }
   0x2   :  { %14 = vsyncpa [#allocation4], 0  ;;  %s3970_s24 = smov [#allocation2]   ;;  %s3898_s28 = scalar_lea.hbm %s4210_s1, 25088 }
   0x3   :  { %s22_s25 = sshll.u32 %s3970_s24, 4  ;;  %p3899_p0 = scmp.ne.s32.totalorder %s4210_s1, %s3898_s28  ;;  %s23_s25 = int_to_ptr.vmem [resolvable:$true] %s22_s25 }
   0x4   :  { %p3902_p1 = scmp.lt.u32.totalorder %s3898_s28, %s4210_s1 }
   0x6   :  { %p3904_p2 = pnand %p3902_p1, %p3899_p0 }
   0x8   :  { %3907 = shalt.err (!%p3904_p2)
}
   0x9   :  { %s3908_s10 = scalar_lea.vmem %s23_s25, 25088  ;;  %p3913_p4 = scmp.lt.s32.totalorder %s23_s25, %s23_s25 }
   0xa   :  { %p3909_p3 = scmp.ne.s32.totalorder %s23_s25, %s3908_s10  ;;  %p3914_p5 = scmp.lt.s32.totalorder %s3908_s10, %s3908_s10 }
   0xc   :  { %p3915_p6 = por %p3914_p5, %p3913_p4 }
   0xe   :  { %p3916_p7 = pnand %p3915_p6, %p3909_p3 }
  0x10   :  { %3919 = shalt.err (!%p3916_p7)
}
  0x11   :  { %s3971_s11 = smov 256   ;;  %s3972_s12 = smov 16  }
  0x12   :  { %28 = dma.hbm_to_vmem [thread:$0]  %s4210_s1, 25088, %s23_s25, [#allocation3], %s3971_s11, %s3971_s11, %s3972_s12  }
  0x13   :  { %s3973_s15 = smov [#allocation5]   ;;  %s3920_s19 = scalar_lea.hbm %s4212_s3, 16384 }
  0x14   :  { %s36_s16 = sshll.u32 %s3973_s15, 4  ;;  %p3921_p8 = scmp.ne.s32.totalorder %s4212_s3, %s3920_s19  ;;  %s37_s16 = int_to_ptr.vmem [resolvable:$true] %s36_s16 }
  0x15   :  { %p3924_p9 = scmp.lt.u32.totalorder %s3920_s19, %s4212_s3 }
  0x17   :  { %p3926_p10 = pnand %p3924_p9, %p3921_p8 }
  0x19   :  { %3929 = shalt.err (!%p3926_p10)
}
  0x1a   :  { %s3930_s24 = scalar_lea.vmem %s37_s16, 16384  ;;  %p3935_p12 = scmp.lt.s32.totalorder %s37_s16, %s37_s16 }
  0x1b   :  { %p3931_p11 = scmp.ne.s32.totalorder %s37_s16, %s3930_s24  ;;  %p3936_p13 = scmp.lt.s32.totalorder %s3930_s24, %s3930_s24 }
  0x1d   :  { %p3937_p0 = por %p3936_p13, %p3935_p12 }
  0x1f   :  { %p3938_p1 = pnand %p3937_p0, %p3931_p11 }
  0x21   :  { %3941 = shalt.err (!%p3938_p1)
}
  0x22   :  { %42 = dma.hbm_to_vmem [thread:$0]  %s4212_s3, 16384, %s37_s16, [#allocation6], %s3971_s11, %s3971_s11, %s3972_s12  }
  0x23   :  { %3964 = dma.done.wait [#allocation3], 25088  }
  0x24   :  { %3965 = vsyncadd [#allocation3], 4294942208 }
  0x25   :  { %3966 = dma.done.wait [#allocation6], 16384  }
  0x26   :  { %3967 = vsyncadd [#allocation6], 4294950912  ;;  %v3380_v0 = vld [vmem:[#allocation2 + $0x4] ss:$16 sps:$4 sm:$0xff]   ;;  %v3382_v1 = vld [vmem:[#allocation2 + $0xc] ss:$16 sps:$4 sm:$0xff]  }
  0x27   :  { %1272 = vmatprep.subr.bf16.mxu0 %v3380_v0  ;;  %v3384_v2 = vld [vmem:[#allocation2] ss:$16 sps:$4 sm:$0xff]   ;;  %v3385_v3 = vld [vmem:[#allocation2 + $0x8] ss:$16 sps:$4 sm:$0xff]   ;;  %1436 = vmatprep.subr.bf16.mxu1 %v3382_v1  ;;  %v3386_v4 = vld [vmem:[#allocation2 + $0x24] ss:$16 sps:$4 sm:$0xff]  }
  0x28   :  { %1273 = vmatpush1.bf16.msra.mxu0 %v3384_v2  ;;  %1437 = vmatpush1.bf16.msra.mxu1 %v3385_v3  ;;  %v3388_v5 = vld [vmem:[#allocation2 + $0x2c] ss:$16 sps:$4 sm:$0xff]   ;;  %v3390_v6 = vld [vmem:[#allocation2 + $0x20] ss:$16 sps:$4 sm:$0xff]   ;;  %v3391_v7 = vld [vmem:[#allocation2 + $0x28] ss:$16 sps:$4 sm:$0xff]  }
  0x29   :  { %1274 = vmatprep.subr.bf16.mxu0 %v3386_v4  ;;  %1438 = vmatprep.subr.bf16.mxu1 %v3388_v5  ;;  %v3392_v8 = vld [vmem:[#allocation2 + $0x44] ss:$16 sps:$4 sm:$0xff]   ;;  %v3394_v9 = vld [vmem:[#allocation2 + $0x4c] ss:$16 sps:$4 sm:$0xff]   ;;  %v3396_v10 = vld [vmem:[#allocation2 + $0x40] ss:$16 sps:$4 sm:$0xff]  }
  0x2a   :  { %v3397_v11 = vld [vmem:[#allocation2 + $0x48] ss:$16 sps:$4 sm:$0xff]   ;;  %v3398_v12 = vld [vmem:[#allocation2 + $0x64] ss:$16 sps:$4 sm:$0xff]   ;;  %v3400_v13 = vld [vmem:[#allocation2 + $0x6c] ss:$16 sps:$4 sm:$0xff]  }
  0x2b   :  { %v3402_v14 = vld [vmem:[#allocation2 + $0x60] ss:$16 sps:$4 sm:$0xff]   ;;  %v3403_v15 = vld [vmem:[#allocation2 + $0x68] ss:$16 sps:$4 sm:$0xff]   ;;  %v3404_v16 = vld [vmem:[#allocation2 + $0x84] ss:$16 sps:$4 sm:$0xff]  }
  0x2c   :  { %1275 = vmatpush1.bf16.msra.mxu0 %v3390_v6  ;;  %1439 = vmatpush1.bf16.msra.mxu1 %v3391_v7  ;;  %v3406_v17 = vld [vmem:[#allocation2 + $0x8c] ss:$16 sps:$4 sm:$0xff]   ;;  %v3408_v18 = vld [vmem:[#allocation2 + $0x80] ss:$16 sps:$4 sm:$0xff]   ;;  %v3409_v19 = vld [vmem:[#allocation2 + $0x88] ss:$16 sps:$4 sm:$0xff]  }
  0x2d   :  { %1276 = vmatprep.subr.bf16.mxu0 %v3392_v8  ;;  %1440 = vmatprep.subr.bf16.mxu1 %v3394_v9  ;;  %v3410_v20 = vld [vmem:[#allocation2 + $0xa4] ss:$16 sps:$4 sm:$0xff]   ;;  %v3412_v21 = vld [vmem:[#allocation2 + $0xac] ss:$16 sps:$4 sm:$0xff]   ;;  %v3414_v22 = vld [vmem:[#allocation2 + $0xa0] ss:$16 sps:$4 sm:$0xff]  }
  0x2e   :  { %v3415_v23 = vld [vmem:[#allocation2 + $0xa8] ss:$16 sps:$4 sm:$0xff]   ;;  %v3416_v24 = vld [vmem:[#allocation2 + $0xc4] ss:$16 sps:$4 sm:$0xff]   ;;  %v3418_v25 = vld [vmem:[#allocation2 + $0xcc] ss:$16 sps:$4 sm:$0xff]  }
  0x2f   :  { %v3420_v26 = vld [vmem:[#allocation2 + $0xc0] ss:$16 sps:$4 sm:$0xff]   ;;  %v3421_v27 = vld [vmem:[#allocation2 + $0xc8] ss:$16 sps:$4 sm:$0xff]   ;;  %v3422_v28 = vld [vmem:[#allocation2 + $0xe4] ss:$16 sps:$4 sm:$0xff]  }
  0x30   :  { %1277 = vmatpush1.bf16.msra.mxu0 %v3396_v10  ;;  %1441 = vmatpush1.bf16.msra.mxu1 %v3397_v11  ;;  %v3424_v29 = vld [vmem:[#allocation2 + $0xec] ss:$16 sps:$4 sm:$0xff]   ;;  %v3426_v30 = vld [vmem:[#allocation2 + $0xe0] ss:$16 sps:$4 sm:$0xff]   ;;  %v3427_v31 = vld [vmem:[#allocation2 + $0xe8] ss:$16 sps:$4 sm:$0xff]  }
  0x31   :  { %1278 = vmatprep.subr.bf16.mxu0 %v3398_v12  ;;  %1442 = vmatprep.subr.bf16.mxu1 %v3400_v13  ;;  %v3428_v32 = vld [vmem:[#allocation2 + $0x104] ss:$16 sps:$4 sm:$0xff]   ;;  %v3430_v33 = vld [vmem:[#allocation2 + $0x10c] ss:$16 sps:$4 sm:$0xff]   ;;  %v3432_v34 = vld [vmem:[#allocation2 + $0x100] ss:$16 sps:$4 sm:$0xff]  }
  0x32   :  { %v3433_v35 = vld [vmem:[#allocation2 + $0x108] ss:$16 sps:$4 sm:$0xff]   ;;  %v3434_v36 = vld [vmem:[#allocation2 + $0x124] ss:$16 sps:$4 sm:$0xff]   ;;  %v3436_v37 = vld [vmem:[#allocation2 + $0x12c] ss:$16 sps:$4 sm:$0xff]  }
  0x33   :  { %v3438_v38 = vld [vmem:[#allocation2 + $0x120] ss:$16 sps:$4 sm:$0xff]   ;;  %v3439_v39 = vld [vmem:[#allocation2 + $0x128] ss:$16 sps:$4 sm:$0xff]   ;;  %v3440_v40 = vld [vmem:[#allocation2 + $0x144] ss:$16 sps:$4 sm:$0xff]  }
  0x34   :  { %1279 = vmatpush1.bf16.msra.mxu0 %v3402_v14  ;;  %1443 = vmatpush1.bf16.msra.mxu1 %v3403_v15  ;;  %v3442_v41 = vld [vmem:[#allocation2 + $0x14c] ss:$16 sps:$4 sm:$0xff]   ;;  %v3444_v42 = vld [vmem:[#allocation2 + $0x140] ss:$16 sps:$4 sm:$0xff]   ;;  %v3445_v43 = vld [vmem:[#allocation2 + $0x148] ss:$16 sps:$4 sm:$0xff]  }
  0x35   :  { %1280 = vmatprep.subr.bf16.mxu0 %v3404_v16  ;;  %1444 = vmatprep.subr.bf16.mxu1 %v3406_v17  ;;  %v3446_v44 = vld [vmem:[#allocation2 + $0x164] ss:$16 sps:$4 sm:$0xff]   ;;  %v3448_v45 = vld [vmem:[#allocation2 + $0x16c] ss:$16 sps:$4 sm:$0xff]   ;;  %v3450_v47 = vld [vmem:[#allocation2 + $0x160] ss:$16 sps:$4 sm:$0xff]  }
  0x36   :  { %v57_v46 = vld [vmem:[%s4209_s0 + $0x8] sm:$0xff]  ;;  %v3452_v50 = vld [vmem:[#allocation2 + $0x184] ss:$16 sps:$4 sm:$0xff]   ;;  %v3456_v52 = vld [vmem:[#allocation2 + $0x180] ss:$16 sps:$4 sm:$0xff]   ;;  %vm1268_vm0 = vcmask 130048  }
  0x37   :  { %v64_v48 = vpack.c.bf16 %v57_v46, %v57_v46  ;;  %v3451_v49 = vld [vmem:[#allocation2 + $0x168] ss:$16 sps:$4 sm:$0xff]   ;;  %v3454_v51 = vld [vmem:[#allocation2 + $0x18c] ss:$16 sps:$4 sm:$0xff]   ;;  %v3458_v54 = vld [vmem:[#allocation2 + $0x1a4] ss:$16 sps:$4 sm:$0xff]  }
  0x38   :  { %1281 = vmatpush1.bf16.msra.mxu0 %v3408_v18  ;;  %1445 = vmatpush1.bf16.msra.mxu1 %v3409_v19  ;;  %v3457_v53 = vld [vmem:[#allocation2 + $0x188] ss:$16 sps:$4 sm:$0xff]   ;;  %v3460_v55 = vld [vmem:[#allocation2 + $0x1ac] ss:$16 sps:$4 sm:$0xff]   ;;  %v3462_v56 = vld [vmem:[#allocation2 + $0x1a0] ss:$16 sps:$4 sm:$0xff]  }
  0x39   :  { %1282 = vmatprep.subr.bf16.mxu0 %v3410_v20  ;;  %1446 = vmatprep.subr.bf16.mxu1 %v3412_v21  ;;  %v3463_v57 = vld [vmem:[#allocation2 + $0x1a8] ss:$16 sps:$4 sm:$0xff]   ;;  %v3464_v58 = vld [vmem:[#allocation2 + $0x1c4] ss:$16 sps:$4 sm:$0xff]   ;;  %v3466_v59 = vld [vmem:[#allocation2 + $0x1cc] ss:$16 sps:$4 sm:$0xff]  }
  0x3a   :  { %1304 = vmatprep.mubr.bf16.mxu0 %v64_v48  ;;  %1468 = vmatprep.mubr.bf16.mxu1 %v64_v48  ;;  %v3468_v60 = vld [vmem:[#allocation2 + $0x1c0] ss:$16 sps:$4 sm:$0xff]   ;;  %v3469_v61 = vld [vmem:[#allocation2 + $0x1c8] ss:$16 sps:$4 sm:$0xff]   ;;  %v3470_v62 = vld [vmem:[#allocation2 + $0x1e4] ss:$16 sps:$4 sm:$0xff]  }
  0x3b   :  { %v3472_v63 = vld [vmem:[#allocation2 + $0x1ec] ss:$16 sps:$4 sm:$0xff]   ;;  %v3474_v0 = vld [vmem:[#allocation2 + $0x1e0] ss:$16 sps:$4 sm:$0xff]   ;;  %v3475_v1 = vld [vmem:[#allocation2 + $0x1e8] ss:$16 sps:$4 sm:$0xff]  }
  0x3c   :  { %1283 = vmatpush1.bf16.msra.mxu0 %v3414_v22  ;;  %1447 = vmatpush1.bf16.msra.mxu1 %v3415_v23  ;;  %v56_v2 = vld [vmem:[%s4209_s0] sm:$0xff]  ;;  %v3481_v4 = vld [vmem:[#allocation2 + $0x20c] ss:$16 sps:$4 sm:$0xff]   ;;  %v3479_v7 = vld [vmem:[#allocation2 + $0x208] ss:$16 sps:$4 sm:$0xff]   ;;  %s3975_s26 = smov [#allocation7]  }
  0x3d   :  { %1284 = vmatprep.subr.bf16.mxu0 %v3416_v24  ;;  %1448 = vmatprep.subr.bf16.mxu1 %v3418_v25  ;;  %v3478_v3 = vld [vmem:[#allocation2 + $0x204] ss:$16 sps:$4 sm:$0xff]   ;;  %v63_v5 = vpack.c.bf16 %v56_v2, %v56_v2  ;;  %v3476_v6 = vld [vmem:[#allocation2 + $0x200] ss:$16 sps:$4 sm:$0xff]   ;;  %v3487_v9 = vld [vmem:[#allocation2 + $0x22c] ss:$16 sps:$4 sm:$0xff]  }
  0x3e   :  { %v3484_v8 = vld [vmem:[#allocation2 + $0x224] ss:$16 sps:$4 sm:$0xff]   ;;  %v3482_v10 = vld [vmem:[#allocation2 + $0x220] ss:$16 sps:$4 sm:$0xff]   ;;  %v3485_v11 = vld [vmem:[#allocation2 + $0x228] ss:$16 sps:$4 sm:$0xff]  }
  0x3f   :  { %v3490_v12 = vld [vmem:[#allocation2 + $0x244] ss:$16 sps:$4 sm:$0xff]   ;;  %v3493_v13 = vld [vmem:[#allocation2 + $0x24c] ss:$16 sps:$4 sm:$0xff]   ;;  %v3488_v14 = vld [vmem:[#allocation2 + $0x240] ss:$16 sps:$4 sm:$0xff]  }
  0x40   :  { %1285 = vmatpush1.bf16.msra.mxu0 %v3420_v26  ;;  %1449 = vmatpush1.bf16.msra.mxu1 %v3421_v27  ;;  %v3491_v15 = vld [vmem:[#allocation2 + $0x248] ss:$16 sps:$4 sm:$0xff]   ;;  %v3496_v16 = vld [vmem:[#allocation2 + $0x264] ss:$16 sps:$4 sm:$0xff]   ;;  %v3499_v17 = vld [vmem:[#allocation2 + $0x26c] ss:$16 sps:$4 sm:$0xff]  }
  0x41   :  { %1286 = vmatprep.subr.bf16.mxu0 %v3422_v28  ;;  %1450 = vmatprep.subr.bf16.mxu1 %v3424_v29  ;;  %v3494_v18 = vld [vmem:[#allocation2 + $0x260] ss:$16 sps:$4 sm:$0xff]   ;;  %v3497_v19 = vld [vmem:[#allocation2 + $0x268] ss:$16 sps:$4 sm:$0xff]   ;;  %v3502_v20 = vld [vmem:[#allocation2 + $0x284] ss:$16 sps:$4 sm:$0xff]  }
  0x42   :  { %v3505_v21 = vld [vmem:[#allocation2 + $0x28c] ss:$16 sps:$4 sm:$0xff]   ;;  %v3500_v22 = vld [vmem:[#allocation2 + $0x280] ss:$16 sps:$4 sm:$0xff]   ;;  %v3503_v23 = vld [vmem:[#allocation2 + $0x288] ss:$16 sps:$4 sm:$0xff]  }
  0x43   :  { %v3508_v24 = vld [vmem:[#allocation2 + $0x2a4] ss:$16 sps:$4 sm:$0xff]   ;;  %v3511_v25 = vld [vmem:[#allocation2 + $0x2ac] ss:$16 sps:$4 sm:$0xff]   ;;  %v3506_v26 = vld [vmem:[#allocation2 + $0x2a0] ss:$16 sps:$4 sm:$0xff]  }
  0x44   :  { %1287 = vmatpush1.bf16.msra.mxu0 %v3426_v30  ;;  %1451 = vmatpush1.bf16.msra.mxu1 %v3427_v31  ;;  %v3509_v27 = vld [vmem:[#allocation2 + $0x2a8] ss:$16 sps:$4 sm:$0xff]   ;;  %v3514_v28 = vld [vmem:[#allocation2 + $0x2c4] ss:$16 sps:$4 sm:$0xff]   ;;  %v3517_v29 = vld [vmem:[#allocation2 + $0x2cc] ss:$16 sps:$4 sm:$0xff]  }
  0x45   :  { %1288 = vmatprep.subr.bf16.mxu0 %v3428_v32  ;;  %1452 = vmatprep.subr.bf16.mxu1 %v3430_v33  ;;  %v59_v30 = vld [vmem:[%s4209_s0 + $0x18] sm:$0xff]  ;;  %v3512_v31 = vld [vmem:[#allocation2 + $0x2c0] ss:$16 sps:$4 sm:$0xff]   ;;  %v3538_v46 = vld [vmem:[#allocation2 + $0x344] ss:$16 sps:$4 sm:$0xff]   ;;  %s2921_s27 = sshll.u32 %s3975_s26, 4  ;;  %s2922_s27 = int_to_ptr.vmem [resolvable:$true] %s2921_s27 }
  0x46   :  { %v66_v32 = vpack.c.bf16 %v59_v30, %v59_v30  ;;  %v3515_v33 = vld [vmem:[#allocation2 + $0x2c8] ss:$16 sps:$4 sm:$0xff]   ;;  %v3536_v48 = vld [vmem:[#allocation2 + $0x340] ss:$16 sps:$4 sm:$0xff]   ;;  %v3568_v2 = vld [vmem:[#allocation2 + $0x3e4] ss:$16 sps:$4 sm:$0xff]   ;;  %p3947_p3 = scmp.lt.s32.totalorder %s2922_s27, %s2922_s27 }
  0x47   :  { %v3604_v30 = vld [vmem:[#allocation2 + $0x4a4] ss:$16 sps:$4 sm:$0xff]   ;;  %s3942_s28 = scalar_lea.vmem %s2922_s27, 128 }
  0x48   :  { %1289 = vmatpush1.bf16.msra.mxu0 %v3432_v34  ;;  %1453 = vmatpush1.bf16.msra.mxu1 %v3433_v35  ;;  %v3520_v34 = vld [vmem:[#allocation2 + $0x2e4] ss:$16 sps:$4 sm:$0xff]   ;;  %v3523_v35 = vld [vmem:[#allocation2 + $0x2ec] ss:$16 sps:$4 sm:$0xff]   ;;  %p3943_p2 = scmp.ne.s32.totalorder %s2922_s27, %s3942_s28  ;;  %p3948_p4 = scmp.lt.s32.totalorder %s3942_s28, %s3942_s28 }
  0x49   :  { %1290 = vmatprep.subr.bf16.mxu0 %v3434_v36  ;;  %1454 = vmatprep.subr.bf16.mxu1 %v3436_v37  ;;  %v3518_v36 = vld [vmem:[#allocation2 + $0x2e0] ss:$16 sps:$4 sm:$0xff]   ;;  %v3521_v37 = vld [vmem:[#allocation2 + $0x2e8] ss:$16 sps:$4 sm:$0xff]  }
  0x4a   :  { %p3949_p5 = por %p3948_p4, %p3947_p3 }
  0x4c   :  { %1291 = vmatpush1.bf16.msra.mxu0 %v3438_v38  ;;  %1455 = vmatpush1.bf16.msra.mxu1 %v3439_v39  ;;  %v3526_v38 = vld [vmem:[#allocation2 + $0x304] ss:$16 sps:$4 sm:$0xff]   ;;  %v3529_v39 = vld [vmem:[#allocation2 + $0x30c] ss:$16 sps:$4 sm:$0xff]   ;;  %p3950_p6 = pnand %p3949_p5, %p3943_p2 }
  0x4d   :  { %1292 = vmatprep.subr.bf16.mxu0 %v3440_v40  ;;  %1456 = vmatprep.subr.bf16.mxu1 %v3442_v41  ;;  %v3524_v40 = vld [vmem:[#allocation2 + $0x300] ss:$16 sps:$4 sm:$0xff]   ;;  %v3527_v41 = vld [vmem:[#allocation2 + $0x308] ss:$16 sps:$4 sm:$0xff]  }
  0x50   :  { %1293 = vmatpush1.bf16.msra.mxu0 %v3444_v42  ;;  %1457 = vmatpush1.bf16.msra.mxu1 %v3445_v43  ;;  %v3532_v42 = vld [vmem:[#allocation2 + $0x324] ss:$16 sps:$4 sm:$0xff]   ;;  %v3535_v43 = vld [vmem:[#allocation2 + $0x32c] ss:$16 sps:$4 sm:$0xff]  }
  0x51   :  { %1294 = vmatprep.subr.bf16.mxu0 %v3446_v44  ;;  %1458 = vmatprep.subr.bf16.mxu1 %v3448_v45  ;;  %v3530_v44 = vld [vmem:[#allocation2 + $0x320] ss:$16 sps:$4 sm:$0xff]   ;;  %v3533_v45 = vld [vmem:[#allocation2 + $0x328] ss:$16 sps:$4 sm:$0xff]  }
  0x54   :  { %1295 = vmatpush1.bf16.msra.mxu0 %v3450_v47  ;;  %1459 = vmatpush1.bf16.msra.mxu1 %v3451_v49  ;;  %v3541_v47 = vld [vmem:[#allocation2 + $0x34c] ss:$16 sps:$4 sm:$0xff]   ;;  %v3539_v49 = vld [vmem:[#allocation2 + $0x348] ss:$16 sps:$4 sm:$0xff]  }
  0x55   :  { %1296 = vmatprep.subr.bf16.mxu0 %v3452_v50  ;;  %1460 = vmatprep.subr.bf16.mxu1 %v3454_v51  ;;  %v3544_v50 = vld [vmem:[#allocation2 + $0x364] ss:$16 sps:$4 sm:$0xff]   ;;  %v3547_v51 = vld [vmem:[#allocation2 + $0x36c] ss:$16 sps:$4 sm:$0xff]  }
  0x58   :  { %1297 = vmatpush1.bf16.msra.mxu0 %v3456_v52  ;;  %1461 = vmatpush1.bf16.msra.mxu1 %v3457_v53  ;;  %v3542_v52 = vld [vmem:[#allocation2 + $0x360] ss:$16 sps:$4 sm:$0xff]   ;;  %v3545_v53 = vld [vmem:[#allocation2 + $0x368] ss:$16 sps:$4 sm:$0xff]  }
  0x59   :  { %1298 = vmatprep.subr.bf16.mxu0 %v3458_v54  ;;  %1462 = vmatprep.subr.bf16.mxu1 %v3460_v55  ;;  %v3550_v54 = vld [vmem:[#allocation2 + $0x384] ss:$16 sps:$4 sm:$0xff]   ;;  %v3553_v55 = vld [vmem:[#allocation2 + $0x38c] ss:$16 sps:$4 sm:$0xff]  }
  0x5c   :  { %1299 = vmatpush1.bf16.msra.mxu0 %v3462_v56  ;;  %1463 = vmatpush1.bf16.msra.mxu1 %v3463_v57  ;;  %v3548_v56 = vld [vmem:[#allocation2 + $0x380] ss:$16 sps:$4 sm:$0xff]   ;;  %v3551_v57 = vld [vmem:[#allocation2 + $0x388] ss:$16 sps:$4 sm:$0xff]  }
  0x5d   :  { %1300 = vmatprep.subr.bf16.mxu0 %v3464_v58  ;;  %1464 = vmatprep.subr.bf16.mxu1 %v3466_v59  ;;  %v3556_v58 = vld [vmem:[#allocation2 + $0x3a4] ss:$16 sps:$4 sm:$0xff]   ;;  %v3559_v59 = vld [vmem:[#allocation2 + $0x3ac] ss:$16 sps:$4 sm:$0xff]  }
  0x60   :  { %1301 = vmatpush1.bf16.msra.mxu0 %v3468_v60  ;;  %1465 = vmatpush1.bf16.msra.mxu1 %v3469_v61  ;;  %v3554_v60 = vld [vmem:[#allocation2 + $0x3a0] ss:$16 sps:$4 sm:$0xff]   ;;  %v3557_v61 = vld [vmem:[#allocation2 + $0x3a8] ss:$16 sps:$4 sm:$0xff]  }
  0x61   :  { %1302 = vmatprep.subr.bf16.mxu0 %v3470_v62  ;;  %1466 = vmatprep.subr.bf16.mxu1 %v3472_v63  ;;  %v3562_v62 = vld [vmem:[#allocation2 + $0x3c4] ss:$16 sps:$4 sm:$0xff]   ;;  %v3565_v63 = vld [vmem:[#allocation2 + $0x3cc] ss:$16 sps:$4 sm:$0xff]  }
  0x64   :  { %1303 = vmatpush1.bf16.msra.mxu0 %v3474_v0  ;;  %1467 = vmatpush1.bf16.msra.mxu1 %v3475_v1  ;;  %v3560_v0 = vld [vmem:[#allocation2 + $0x3c0] ss:$16 sps:$4 sm:$0xff]   ;;  %v3563_v1 = vld [vmem:[#allocation2 + $0x3c8] ss:$16 sps:$4 sm:$0xff]  }
  0x65   :  { %1313 = vmatprep.subr.bf16.mxu0 %v3478_v3  ;;  %1477 = vmatprep.subr.bf16.mxu1 %v3481_v4  ;;  %v3571_v3 = vld [vmem:[#allocation2 + $0x3ec] ss:$16 sps:$4 sm:$0xff]   ;;  %v3566_v4 = vld [vmem:[#allocation2 + $0x3e0] ss:$16 sps:$4 sm:$0xff]  }
  0x67   :  { %1305 = vmatmul.mubr.bf16.vlgmr.msra.gmra.mrb[0].mxu0 %v63_v5  ;;  %1469 = vmatmul.mubr.bf16.vlgmr.msra.gmra.mrb[0].mxu1 %v63_v5  ;;  %v3569_v5 = vld [vmem:[#allocation2 + $0x3e8] ss:$16 sps:$4 sm:$0xff]  }
  0x68   :  { %1314 = vmatpush1.bf16.msra.mxu0 %v3476_v6  ;;  %1478 = vmatpush1.bf16.msra.mxu1 %v3479_v7  ;;  %v3574_v6 = vld [vmem:[#allocation2 + $0x404] ss:$16 sps:$4 sm:$0xff]  }
  0x69   :  { %1315 = vmatprep.subr.bf16.mxu0 %v3484_v8  ;;  %1479 = vmatprep.subr.bf16.mxu1 %v3487_v9  ;;  %v58_v7 = vld [vmem:[%s4209_s0 + $0x10] sm:$0xff]  ;;  %v3577_v8 = vld [vmem:[#allocation2 + $0x40c] ss:$16 sps:$4 sm:$0xff]  }
  0x6a   :  { %1345 = vmatprep.mubr.bf16.mxu0 %v66_v32  ;;  %1509 = vmatprep.mubr.bf16.mxu1 %v66_v32  ;;  %v3572_v9 = vld [vmem:[#allocation2 + $0x400] ss:$16 sps:$4 sm:$0xff]  }
  0x6b   :  { %v3602_v32 = vld [vmem:[#allocation2 + $0x4a0] ss:$16 sps:$4 sm:$0xff]  }
  0x6c   :  { %1316 = vmatpush1.bf16.msra.mxu0 %v3482_v10  ;;  %1480 = vmatpush1.bf16.msra.mxu1 %v3485_v11  ;;  %v65_v10 = vpack.c.bf16 %v58_v7, %v58_v7  ;;  %v3575_v11 = vld [vmem:[#allocation2 + $0x408] ss:$16 sps:$4 sm:$0xff]   ;;  %v3667_v7 = vld [vmem:[#allocation2 + $0x5ec] ss:$16 sps:$4 sm:$0xff]  }
  0x6d   :  { %1317 = vmatprep.subr.bf16.mxu0 %v3490_v12  ;;  %1481 = vmatprep.subr.bf16.mxu1 %v3493_v13  ;;  %v3580_v12 = vld [vmem:[#allocation2 + $0x424] ss:$16 sps:$4 sm:$0xff]   ;;  %v3583_v13 = vld [vmem:[#allocation2 + $0x42c] ss:$16 sps:$4 sm:$0xff]  }
  0x70   :  { %1318 = vmatpush1.bf16.msra.mxu0 %v3488_v14  ;;  %1482 = vmatpush1.bf16.msra.mxu1 %v3491_v15  ;;  %v61_v14 = vld [vmem:[%s4209_s0 + $0x28] sm:$0xff] }
  0x71   :  { %1319 = vmatprep.subr.bf16.mxu0 %v3496_v16  ;;  %1483 = vmatprep.subr.bf16.mxu1 %v3499_v17  ;;  %v68_v15 = vpack.c.bf16 %v61_v14, %v61_v14  ;;  %v3578_v16 = vld [vmem:[#allocation2 + $0x420] ss:$16 sps:$4 sm:$0xff]   ;;  %v3581_v17 = vld [vmem:[#allocation2 + $0x428] ss:$16 sps:$4 sm:$0xff]  }
  0x72   :  { %v3671_v14 = vld [vmem:[#allocation2 + $0x608] ss:$16 sps:$4 sm:$0xff]  }
  0x74   :  { %1320 = vmatpush1.bf16.msra.mxu0 %v3494_v18  ;;  %1484 = vmatpush1.bf16.msra.mxu1 %v3497_v19  ;;  %v3586_v18 = vld [vmem:[#allocation2 + $0x444] ss:$16 sps:$4 sm:$0xff]   ;;  %v3589_v19 = vld [vmem:[#allocation2 + $0x44c] ss:$16 sps:$4 sm:$0xff]  }
  0x75   :  { %1321 = vmatprep.subr.bf16.mxu0 %v3502_v20  ;;  %1485 = vmatprep.subr.bf16.mxu1 %v3505_v21  ;;  %v3584_v20 = vld [vmem:[#allocation2 + $0x440] ss:$16 sps:$4 sm:$0xff]   ;;  %v3587_v21 = vld [vmem:[#allocation2 + $0x448] ss:$16 sps:$4 sm:$0xff]  }
  0x78   :  { %1322 = vmatpush1.bf16.msra.mxu0 %v3500_v22  ;;  %1486 = vmatpush1.bf16.msra.mxu1 %v3503_v23  ;;  %v3592_v22 = vld [vmem:[#allocation2 + $0x464] ss:$16 sps:$4 sm:$0xff]   ;;  %v3595_v23 = vld [vmem:[#allocation2 + $0x46c] ss:$16 sps:$4 sm:$0xff]  }
  0x79   :  { %1323 = vmatprep.subr.bf16.mxu0 %v3508_v24  ;;  %1487 = vmatprep.subr.bf16.mxu1 %v3511_v25  ;;  %v3590_v24 = vld [vmem:[#allocation2 + $0x460] ss:$16 sps:$4 sm:$0xff]   ;;  %v3593_v25 = vld [vmem:[#allocation2 + $0x468] ss:$16 sps:$4 sm:$0xff]  }
  0x7c   :  { %1324 = vmatpush1.bf16.msra.mxu0 %v3506_v26  ;;  %1488 = vmatpush1.bf16.msra.mxu1 %v3509_v27  ;;  %v3598_v26 = vld [vmem:[#allocation2 + $0x484] ss:$16 sps:$4 sm:$0xff]   ;;  %v3601_v27 = vld [vmem:[#allocation2 + $0x48c] ss:$16 sps:$4 sm:$0xff]  }
  0x7d   :  { %1325 = vmatprep.subr.bf16.mxu0 %v3514_v28  ;;  %1489 = vmatprep.subr.bf16.mxu1 %v3517_v29  ;;  %v3596_v28 = vld [vmem:[#allocation2 + $0x480] ss:$16 sps:$4 sm:$0xff]   ;;  %v3599_v29 = vld [vmem:[#allocation2 + $0x488] ss:$16 sps:$4 sm:$0xff]  }
  0x80   :  { %1326 = vmatpush1.bf16.msra.mxu0 %v3512_v31  ;;  %1490 = vmatpush1.bf16.msra.mxu1 %v3515_v33  ;;  %v3607_v31 = vld [vmem:[#allocation2 + $0x4ac] ss:$16 sps:$4 sm:$0xff]   ;;  %v3605_v33 = vld [vmem:[#allocation2 + $0x4a8] ss:$16 sps:$4 sm:$0xff]  }
  0x81   :  { %1327 = vmatprep.subr.bf16.mxu0 %v3520_v34  ;;  %1491 = vmatprep.subr.bf16.mxu1 %v3523_v35  ;;  %v3610_v34 = vld [vmem:[#allocation2 + $0x4c4] ss:$16 sps:$4 sm:$0xff]   ;;  %v3613_v35 = vld [vmem:[#allocation2 + $0x4cc] ss:$16 sps:$4 sm:$0xff]  }
  0x84   :  { %1328 = vmatpush1.bf16.msra.mxu0 %v3518_v36  ;;  %1492 = vmatpush1.bf16.msra.mxu1 %v3521_v37  ;;  %v3608_v36 = vld [vmem:[#allocation2 + $0x4c0] ss:$16 sps:$4 sm:$0xff]   ;;  %v3611_v37 = vld [vmem:[#allocation2 + $0x4c8] ss:$16 sps:$4 sm:$0xff]  }
  0x85   :  { %1329 = vmatprep.subr.bf16.mxu0 %v3526_v38  ;;  %1493 = vmatprep.subr.bf16.mxu1 %v3529_v39  ;;  %v3616_v38 = vld [vmem:[#allocation2 + $0x4e4] ss:$16 sps:$4 sm:$0xff]   ;;  %v3619_v39 = vld [vmem:[#allocation2 + $0x4ec] ss:$16 sps:$4 sm:$0xff]  }
  0x88   :  { %1330 = vmatpush1.bf16.msra.mxu0 %v3524_v40  ;;  %1494 = vmatpush1.bf16.msra.mxu1 %v3527_v41  ;;  %v3614_v40 = vld [vmem:[#allocation2 + $0x4e0] ss:$16 sps:$4 sm:$0xff]   ;;  %v3617_v41 = vld [vmem:[#allocation2 + $0x4e8] ss:$16 sps:$4 sm:$0xff]  }
  0x89   :  { %1331 = vmatprep.subr.bf16.mxu0 %v3532_v42  ;;  %1495 = vmatprep.subr.bf16.mxu1 %v3535_v43  ;;  %v3622_v42 = vld [vmem:[#allocation2 + $0x504] ss:$16 sps:$4 sm:$0xff]   ;;  %v3625_v43 = vld [vmem:[#allocation2 + $0x50c] ss:$16 sps:$4 sm:$0xff]  }
  0x8c   :  { %1332 = vmatpush1.bf16.msra.mxu0 %v3530_v44  ;;  %1496 = vmatpush1.bf16.msra.mxu1 %v3533_v45  ;;  %v3620_v44 = vld [vmem:[#allocation2 + $0x500] ss:$16 sps:$4 sm:$0xff]   ;;  %v3623_v45 = vld [vmem:[#allocation2 + $0x508] ss:$16 sps:$4 sm:$0xff]  }
  0x8d   :  { %1333 = vmatprep.subr.bf16.mxu0 %v3538_v46  ;;  %1497 = vmatprep.subr.bf16.mxu1 %v3541_v47  ;;  %v3628_v46 = vld [vmem:[#allocation2 + $0x524] ss:$16 sps:$4 sm:$0xff]   ;;  %v3631_v47 = vld [vmem:[#allocation2 + $0x52c] ss:$16 sps:$4 sm:$0xff]  }
  0x90   :  { %1334 = vmatpush1.bf16.msra.mxu0 %v3536_v48  ;;  %1498 = vmatpush1.bf16.msra.mxu1 %v3539_v49  ;;  %v3626_v48 = vld [vmem:[#allocation2 + $0x520] ss:$16 sps:$4 sm:$0xff]   ;;  %v3629_v49 = vld [vmem:[#allocation2 + $0x528] ss:$16 sps:$4 sm:$0xff]  }
  0x91   :  { %1335 = vmatprep.subr.bf16.mxu0 %v3544_v50  ;;  %1499 = vmatprep.subr.bf16.mxu1 %v3547_v51  ;;  %v3634_v50 = vld [vmem:[#allocation2 + $0x544] ss:$16 sps:$4 sm:$0xff]   ;;  %v3637_v51 = vld [vmem:[#allocation2 + $0x54c] ss:$16 sps:$4 sm:$0xff]  }
  0x94   :  { %1336 = vmatpush1.bf16.msra.mxu0 %v3542_v52  ;;  %1500 = vmatpush1.bf16.msra.mxu1 %v3545_v53  ;;  %v3632_v52 = vld [vmem:[#allocation2 + $0x540] ss:$16 sps:$4 sm:$0xff]   ;;  %v3635_v53 = vld [vmem:[#allocation2 + $0x548] ss:$16 sps:$4 sm:$0xff]  }
  0x95   :  { %1337 = vmatprep.subr.bf16.mxu0 %v3550_v54  ;;  %1501 = vmatprep.subr.bf16.mxu1 %v3553_v55  ;;  %v3640_v54 = vld [vmem:[#allocation2 + $0x564] ss:$16 sps:$4 sm:$0xff]   ;;  %v3643_v55 = vld [vmem:[#allocation2 + $0x56c] ss:$16 sps:$4 sm:$0xff]  }
  0x98   :  { %1338 = vmatpush1.bf16.msra.mxu0 %v3548_v56  ;;  %1502 = vmatpush1.bf16.msra.mxu1 %v3551_v57  ;;  %v3638_v56 = vld [vmem:[#allocation2 + $0x560] ss:$16 sps:$4 sm:$0xff]   ;;  %v3641_v57 = vld [vmem:[#allocation2 + $0x568] ss:$16 sps:$4 sm:$0xff]  }
  0x99   :  { %1339 = vmatprep.subr.bf16.mxu0 %v3556_v58  ;;  %1503 = vmatprep.subr.bf16.mxu1 %v3559_v59  ;;  %v3646_v58 = vld [vmem:[#allocation2 + $0x584] ss:$16 sps:$4 sm:$0xff]   ;;  %v3649_v59 = vld [vmem:[#allocation2 + $0x58c] ss:$16 sps:$4 sm:$0xff]  }
  0x9c   :  { %1340 = vmatpush1.bf16.msra.mxu0 %v3554_v60  ;;  %1504 = vmatpush1.bf16.msra.mxu1 %v3557_v61  ;;  %v3644_v60 = vld [vmem:[#allocation2 + $0x580] ss:$16 sps:$4 sm:$0xff]   ;;  %v3647_v61 = vld [vmem:[#allocation2 + $0x588] ss:$16 sps:$4 sm:$0xff]  }
  0x9d   :  { %1341 = vmatprep.subr.bf16.mxu0 %v3562_v62  ;;  %1505 = vmatprep.subr.bf16.mxu1 %v3565_v63  ;;  %v3652_v62 = vld [vmem:[#allocation2 + $0x5a4] ss:$16 sps:$4 sm:$0xff]   ;;  %v3655_v63 = vld [vmem:[#allocation2 + $0x5ac] ss:$16 sps:$4 sm:$0xff]  }
  0xa0   :  { %1342 = vmatpush1.bf16.msra.mxu0 %v3560_v0  ;;  %1506 = vmatpush1.bf16.msra.mxu1 %v3563_v1  ;;  %v3650_v0 = vld [vmem:[#allocation2 + $0x5a0] ss:$16 sps:$4 sm:$0xff]   ;;  %v3653_v1 = vld [vmem:[#allocation2 + $0x5a8] ss:$16 sps:$4 sm:$0xff]  }
  0xa1   :  { %1343 = vmatprep.subr.bf16.mxu0 %v3568_v2  ;;  %1507 = vmatprep.subr.bf16.mxu1 %v3571_v3  ;;  %v3658_v2 = vld [vmem:[#allocation2 + $0x5c4] ss:$16 sps:$4 sm:$0xff]   ;;  %v3661_v3 = vld [vmem:[#allocation2 + $0x5cc] ss:$16 sps:$4 sm:$0xff]  }
  0xa4   :  { %1344 = vmatpush1.bf16.msra.mxu0 %v3566_v4  ;;  %1508 = vmatpush1.bf16.msra.mxu1 %v3569_v5  ;;  %v3656_v4 = vld [vmem:[#allocation2 + $0x5c0] ss:$16 sps:$4 sm:$0xff]   ;;  %v3659_v5 = vld [vmem:[#allocation2 + $0x5c8] ss:$16 sps:$4 sm:$0xff]  }
  0xa5   :  { %1354 = vmatprep.subr.bf16.mxu0 %v3574_v6  ;;  %1518 = vmatprep.subr.bf16.mxu1 %v3577_v8  ;;  %v3664_v6 = vld [vmem:[#allocation2 + $0x5e4] ss:$16 sps:$4 sm:$0xff]   ;;  %v3662_v8 = vld [vmem:[#allocation2 + $0x5e0] ss:$16 sps:$4 sm:$0xff]  }
  0xa7   :  { %1346 = vmatmul.mubr.bf16.vlgmr.msra.gmra.mrb[0].mxu0 %v65_v10  ;;  %1510 = vmatmul.mubr.bf16.vlgmr.msra.gmra.mrb[0].mxu1 %v65_v10  ;;  %v60_v10 = vld [vmem:[%s4209_s0 + $0x20] sm:$0xff] }
  0xa8   :  { %1355 = vmatpush1.bf16.msra.mxu0 %v3572_v9  ;;  %1519 = vmatpush1.bf16.msra.mxu1 %v3575_v11  ;;  %v3665_v9 = vld [vmem:[#allocation2 + $0x5e8] ss:$16 sps:$4 sm:$0xff]   ;;  %v3670_v11 = vld [vmem:[#allocation2 + $0x604] ss:$16 sps:$4 sm:$0xff]  }
  0xa9   :  { %1356 = vmatprep.subr.bf16.mxu0 %v3580_v12  ;;  %1520 = vmatprep.subr.bf16.mxu1 %v3583_v13  ;;  %v3673_v12 = vld [vmem:[#allocation2 + $0x60c] ss:$16 sps:$4 sm:$0xff]   ;;  %v3668_v13 = vld [vmem:[#allocation2 + $0x600] ss:$16 sps:$4 sm:$0xff]  }
  0xaa   :  { %1386 = vmatprep.mubr.bf16.mxu0 %v68_v15  ;;  %1550 = vmatprep.mubr.bf16.mxu1 %v68_v15  ;;  %v67_v15 = vpack.c.bf16 %v60_v10, %v60_v10  ;;  %v3755_v10 = vld [vmem:[#allocation5 + $0x1a8] ss:$16 sps:$4 sm:$0xff]  }
  0xac   :  { %1357 = vmatpush1.bf16.msra.mxu0 %v3578_v16  ;;  %1521 = vmatpush1.bf16.msra.mxu1 %v3581_v17  ;;  %v3676_v16 = vld [vmem:[#allocation5 + $0x4] ss:$16 sps:$4 sm:$0xff]   ;;  %v3679_v17 = vld [vmem:[#allocation5 + $0xc] ss:$16 sps:$4 sm:$0xff]  }
  0xad   :  { %1358 = vmatprep.subr.bf16.mxu0 %v3586_v18  ;;  %1522 = vmatprep.subr.bf16.mxu1 %v3589_v19  ;;  %v3974_v18 = vmov 0   ;;  %v62_v19 = vld [vmem:[%s4209_s0 + $0x30] sm:$0xff] }
  0xb0   :  { %1359 = vmatpush1.bf16.msra.mxu0 %v3584_v20  ;;  %1523 = vmatpush1.bf16.msra.mxu1 %v3587_v21  ;;  %v3674_v20 = vld [vmem:[#allocation5] ss:$16 sps:$4 sm:$0xff]   ;;  %v3677_v21 = vld [vmem:[#allocation5 + $0x8] ss:$16 sps:$4 sm:$0xff]  }
  0xb1   :  { %1360 = vmatprep.subr.bf16.mxu0 %v3592_v22  ;;  %1524 = vmatprep.subr.bf16.mxu1 %v3595_v23  ;;  %v69_v22 = vpack.c.bf16 %v62_v19, %v62_v19  ;;  %v3682_v23 = vld [vmem:[#allocation5 + $0x24] ss:$16 sps:$4 sm:$0xff]  }
  0xb2   :  { %v3772_v19 = vld [vmem:[#allocation5 + $0x204] ss:$16 sps:$4 sm:$0xff]  }
  0xb4   :  { %1361 = vmatpush1.bf16.msra.mxu0 %v3590_v24  ;;  %1525 = vmatpush1.bf16.msra.mxu1 %v3593_v25  ;;  %v3685_v24 = vld [vmem:[#allocation5 + $0x2c] ss:$16 sps:$4 sm:$0xff]   ;;  %v3680_v25 = vld [vmem:[#allocation5 + $0x20] ss:$16 sps:$4 sm:$0xff]  }
  0xb5   :  { %1362 = vmatprep.subr.bf16.mxu0 %v3598_v26  ;;  %1526 = vmatprep.subr.bf16.mxu1 %v3601_v27  ;;  %v3683_v26 = vld [vmem:[#allocation5 + $0x28] ss:$16 sps:$4 sm:$0xff]   ;;  %v3688_v27 = vld [vmem:[#allocation5 + $0x44] ss:$16 sps:$4 sm:$0xff]  }
  0xb8   :  { %1363 = vmatpush1.bf16.msra.mxu0 %v3596_v28  ;;  %1527 = vmatpush1.bf16.msra.mxu1 %v3599_v29  ;;  %v3691_v28 = vld [vmem:[#allocation5 + $0x4c] ss:$16 sps:$4 sm:$0xff]   ;;  %v3686_v29 = vld [vmem:[#allocation5 + $0x40] ss:$16 sps:$4 sm:$0xff]  }
  0xb9   :  { %1364 = vmatprep.subr.bf16.mxu0 %v3604_v30  ;;  %1528 = vmatprep.subr.bf16.mxu1 %v3607_v31  ;;  %v3689_v30 = vld [vmem:[#allocation5 + $0x48] ss:$16 sps:$4 sm:$0xff]   ;;  %v3694_v31 = vld [vmem:[#allocation5 + $0x64] ss:$16 sps:$4 sm:$0xff]  }
  0xbc   :  { %1365 = vmatpush1.bf16.msra.mxu0 %v3602_v32  ;;  %1529 = vmatpush1.bf16.msra.mxu1 %v3605_v33  ;;  %v3697_v32 = vld [vmem:[#allocation5 + $0x6c] ss:$16 sps:$4 sm:$0xff]   ;;  %v3692_v33 = vld [vmem:[#allocation5 + $0x60] ss:$16 sps:$4 sm:$0xff]  }
  0xbd   :  { %1366 = vmatprep.subr.bf16.mxu0 %v3610_v34  ;;  %1530 = vmatprep.subr.bf16.mxu1 %v3613_v35  ;;  %v3695_v34 = vld [vmem:[#allocation5 + $0x68] ss:$16 sps:$4 sm:$0xff]   ;;  %v3700_v35 = vld [vmem:[#allocation5 + $0x84] ss:$16 sps:$4 sm:$0xff]  }
  0xc0   :  { %1367 = vmatpush1.bf16.msra.mxu0 %v3608_v36  ;;  %1531 = vmatpush1.bf16.msra.mxu1 %v3611_v37  ;;  %v3703_v36 = vld [vmem:[#allocation5 + $0x8c] ss:$16 sps:$4 sm:$0xff]   ;;  %v3698_v37 = vld [vmem:[#allocation5 + $0x80] ss:$16 sps:$4 sm:$0xff]  }
  0xc1   :  { %1368 = vmatprep.subr.bf16.mxu0 %v3616_v38  ;;  %1532 = vmatprep.subr.bf16.mxu1 %v3619_v39  ;;  %v3701_v38 = vld [vmem:[#allocation5 + $0x88] ss:$16 sps:$4 sm:$0xff]   ;;  %v3706_v39 = vld [vmem:[#allocation5 + $0xa4] ss:$16 sps:$4 sm:$0xff]  }
  0xc4   :  { %1369 = vmatpush1.bf16.msra.mxu0 %v3614_v40  ;;  %1533 = vmatpush1.bf16.msra.mxu1 %v3617_v41  ;;  %v3709_v40 = vld [vmem:[#allocation5 + $0xac] ss:$16 sps:$4 sm:$0xff]   ;;  %v3704_v41 = vld [vmem:[#allocation5 + $0xa0] ss:$16 sps:$4 sm:$0xff]  }
  0xc5   :  { %1370 = vmatprep.subr.bf16.mxu0 %v3622_v42  ;;  %1534 = vmatprep.subr.bf16.mxu1 %v3625_v43  ;;  %v3707_v42 = vld [vmem:[#allocation5 + $0xa8] ss:$16 sps:$4 sm:$0xff]   ;;  %v3712_v43 = vld [vmem:[#allocation5 + $0xc4] ss:$16 sps:$4 sm:$0xff]  }
  0xc8   :  { %1371 = vmatpush1.bf16.msra.mxu0 %v3620_v44  ;;  %1535 = vmatpush1.bf16.msra.mxu1 %v3623_v45  ;;  %v3715_v44 = vld [vmem:[#allocation5 + $0xcc] ss:$16 sps:$4 sm:$0xff]   ;;  %v3710_v45 = vld [vmem:[#allocation5 + $0xc0] ss:$16 sps:$4 sm:$0xff]  }
  0xc9   :  { %1372 = vmatprep.subr.bf16.mxu0 %v3628_v46  ;;  %1536 = vmatprep.subr.bf16.mxu1 %v3631_v47  ;;  %v3713_v46 = vld [vmem:[#allocation5 + $0xc8] ss:$16 sps:$4 sm:$0xff]   ;;  %v3718_v47 = vld [vmem:[#allocation5 + $0xe4] ss:$16 sps:$4 sm:$0xff]  }
  0xcc   :  { %1373 = vmatpush1.bf16.msra.mxu0 %v3626_v48  ;;  %1537 = vmatpush1.bf16.msra.mxu1 %v3629_v49  ;;  %v3721_v48 = vld [vmem:[#allocation5 + $0xec] ss:$16 sps:$4 sm:$0xff]   ;;  %v3716_v49 = vld [vmem:[#allocation5 + $0xe0] ss:$16 sps:$4 sm:$0xff]  }
  0xcd   :  { %1374 = vmatprep.subr.bf16.mxu0 %v3634_v50  ;;  %1538 = vmatprep.subr.bf16.mxu1 %v3637_v51  ;;  %v3719_v50 = vld [vmem:[#allocation5 + $0xe8] ss:$16 sps:$4 sm:$0xff]   ;;  %v3724_v51 = vld [vmem:[#allocation5 + $0x104] ss:$16 sps:$4 sm:$0xff]  }
  0xd0   :  { %1375 = vmatpush1.bf16.msra.mxu0 %v3632_v52  ;;  %1539 = vmatpush1.bf16.msra.mxu1 %v3635_v53  ;;  %v3727_v52 = vld [vmem:[#allocation5 + $0x10c] ss:$16 sps:$4 sm:$0xff]   ;;  %v3722_v53 = vld [vmem:[#allocation5 + $0x100] ss:$16 sps:$4 sm:$0xff]  }
  0xd1   :  { %1376 = vmatprep.subr.bf16.mxu0 %v3640_v54  ;;  %1540 = vmatprep.subr.bf16.mxu1 %v3643_v55  ;;  %v3725_v54 = vld [vmem:[#allocation5 + $0x108] ss:$16 sps:$4 sm:$0xff]   ;;  %v3730_v55 = vld [vmem:[#allocation5 + $0x124] ss:$16 sps:$4 sm:$0xff]  }
  0xd4   :  { %1377 = vmatpush1.bf16.msra.mxu0 %v3638_v56  ;;  %1541 = vmatpush1.bf16.msra.mxu1 %v3641_v57  ;;  %v3733_v56 = vld [vmem:[#allocation5 + $0x12c] ss:$16 sps:$4 sm:$0xff]   ;;  %v3728_v57 = vld [vmem:[#allocation5 + $0x120] ss:$16 sps:$4 sm:$0xff]  }
  0xd5   :  { %1378 = vmatprep.subr.bf16.mxu0 %v3646_v58  ;;  %1542 = vmatprep.subr.bf16.mxu1 %v3649_v59  ;;  %v3731_v58 = vld [vmem:[#allocation5 + $0x128] ss:$16 sps:$4 sm:$0xff]   ;;  %v3736_v59 = vld [vmem:[#allocation5 + $0x144] ss:$16 sps:$4 sm:$0xff]  }
  0xd8   :  { %1379 = vmatpush1.bf16.msra.mxu0 %v3644_v60  ;;  %1543 = vmatpush1.bf16.msra.mxu1 %v3647_v61  ;;  %v3739_v60 = vld [vmem:[#allocation5 + $0x14c] ss:$16 sps:$4 sm:$0xff]   ;;  %v3734_v61 = vld [vmem:[#allocation5 + $0x140] ss:$16 sps:$4 sm:$0xff]  }
  0xd9   :  { %1380 = vmatprep.subr.bf16.mxu0 %v3652_v62  ;;  %1544 = vmatprep.subr.bf16.mxu1 %v3655_v63  ;;  %v3737_v62 = vld [vmem:[#allocation5 + $0x148] ss:$16 sps:$4 sm:$0xff]   ;;  %v3742_v63 = vld [vmem:[#allocation5 + $0x164] ss:$16 sps:$4 sm:$0xff]  }
  0xdc   :  { %1381 = vmatpush1.bf16.msra.mxu0 %v3650_v0  ;;  %1545 = vmatpush1.bf16.msra.mxu1 %v3653_v1  ;;  %v3745_v0 = vld [vmem:[#allocation5 + $0x16c] ss:$16 sps:$4 sm:$0xff]   ;;  %v3740_v1 = vld [vmem:[#allocation5 + $0x160] ss:$16 sps:$4 sm:$0xff]  }
  0xdd   :  { %1382 = vmatprep.subr.bf16.mxu0 %v3658_v2  ;;  %1546 = vmatprep.subr.bf16.mxu1 %v3661_v3  ;;  %v3743_v2 = vld [vmem:[#allocation5 + $0x168] ss:$16 sps:$4 sm:$0xff]   ;;  %v3748_v3 = vld [vmem:[#allocation5 + $0x184] ss:$16 sps:$4 sm:$0xff]  }
  0xe0   :  { %1383 = vmatpush1.bf16.msra.mxu0 %v3656_v4  ;;  %1547 = vmatpush1.bf16.msra.mxu1 %v3659_v5  ;;  %v3751_v4 = vld [vmem:[#allocation5 + $0x18c] ss:$16 sps:$4 sm:$0xff]   ;;  %v3746_v5 = vld [vmem:[#allocation5 + $0x180] ss:$16 sps:$4 sm:$0xff]  }
  0xe1   :  { %1384 = vmatprep.subr.bf16.mxu0 %v3664_v6  ;;  %1548 = vmatprep.subr.bf16.mxu1 %v3667_v7  ;;  %v3749_v6 = vld [vmem:[#allocation5 + $0x188] ss:$16 sps:$4 sm:$0xff]   ;;  %v3754_v7 = vld [vmem:[#allocation5 + $0x1a4] ss:$16 sps:$4 sm:$0xff]  }
  0xe4   :  { %1385 = vmatpush1.bf16.msra.mxu0 %v3662_v8  ;;  %1549 = vmatpush1.bf16.msra.mxu1 %v3665_v9  ;;  %v3757_v8 = vld [vmem:[#allocation5 + $0x1ac] ss:$16 sps:$4 sm:$0xff]   ;;  %v3752_v9 = vld [vmem:[#allocation5 + $0x1a0] ss:$16 sps:$4 sm:$0xff]  }
  0xe5   :  { %1395 = vmatprep.subr.bf16.mxu0 %v3670_v11  ;;  %1559 = vmatprep.subr.bf16.mxu1 %v3673_v12  ;;  %v3760_v11 = vld [vmem:[#allocation5 + $0x1c4] ss:$16 sps:$4 sm:$0xff]   ;;  %v3763_v12 = vld [vmem:[#allocation5 + $0x1cc] ss:$16 sps:$4 sm:$0xff]  }
  0xe7   :  { %1387 = vmatmul.mubr.bf16.vlgmr.msra.gmra.mrb[0].mxu0 %v67_v15  ;;  %1551 = vmatmul.mubr.bf16.vlgmr.msra.gmra.mrb[0].mxu1 %v67_v15  ;;  %v3766_v15 = vld [vmem:[#allocation5 + $0x1e4] ss:$16 sps:$4 sm:$0xff]  }
  0xe8   :  { %1396 = vmatpush1.bf16.msra.mxu0 %v3668_v13  ;;  %1560 = vmatpush1.bf16.msra.mxu1 %v3671_v14  ;;  %v3758_v13 = vld [vmem:[#allocation5 + $0x1c0] ss:$16 sps:$4 sm:$0xff]   ;;  %v3761_v14 = vld [vmem:[#allocation5 + $0x1c8] ss:$16 sps:$4 sm:$0xff]  }
  0xe9   :  { %1427 = vmatprep.mubr.bf16.mxu0 %v3974_v18  ;;  %1591 = vmatprep.mubr.bf16.mxu1 %v3974_v18  ;;  %v3767_v18 = vld [vmem:[#allocation5 + $0x1e8] ss:$16 sps:$4 sm:$0xff]  }
  0xea   :  { %2398 = vmatprep.subr.bf16.mxu0 %v3676_v16  ;;  %2480 = vmatprep.subr.bf16.mxu1 %v3679_v17  ;;  %v3769_v16 = vld [vmem:[#allocation5 + $0x1ec] ss:$16 sps:$4 sm:$0xff]   ;;  %v3764_v17 = vld [vmem:[#allocation5 + $0x1e0] ss:$16 sps:$4 sm:$0xff]  }
  0xf3   :  { %3127 = vmatmul.mubr.msk.bf16.vlgmr.msra.gmra.mrb[0].mxu0 %vm1268_vm0, %v69_v22  ;;  %3128 = vmatmul.mubr.msk.bf16.vlgmr.msra.gmra.mrb[0].mxu1 %vm1268_vm0, %v69_v22 }
  0xf4   :  { %2399 = vmatpush1.bf16.msra.mxu0 %v3674_v20  ;;  %2481 = vmatpush1.bf16.msra.mxu1 %v3677_v21  ;;  %v3775_v20 = vld [vmem:[#allocation5 + $0x20c] ss:$16 sps:$4 sm:$0xff]   ;;  %v268_v21 = vlaneseq }
  0xf5   :  { %2400 = vmatprep.subr.bf16.mxu0 %v3682_v23  ;;  %2482 = vmatprep.subr.bf16.mxu1 %v3685_v24  ;;  %v4067_v24 = vld [vmem:[%s4211_s2] sm:$0xf] }
  0xf6   :  { %v4061_v22 = vshrl.u32 %v268_v21, 7  ;;  %v3832_v21 = vld [vmem:[#allocation5 + $0x344] ss:$16 sps:$4 sm:$0xff]  }
  0xf8   :  { %2401 = vmatpush1.bf16.msra.mxu0 %v3680_v25  ;;  %2483 = vmatpush1.bf16.msra.mxu1 %v3683_v26  ;;  %v270_v23 = vsub.s32 0, %v4061_v22  ;;  %v274_v25 = vsub.s32 1, %v4061_v22  ;;  %v282_v26 = vsub.s32 3, %v4061_v22 }
  0xf9   :  { %2402 = vmatprep.subr.bf16.mxu0 %v3688_v27  ;;  %2484 = vmatprep.subr.bf16.mxu1 %v3691_v28 }
  0xfa   :  { %v271_v27 = vrot.slane %v4067_v24, %v270_v23  ;;  %v275_v28 = vrot.slane %v4067_v24, %v274_v25 }
  0xfc   :  { %2403 = vmatpush1.bf16.msra.mxu0 %v3686_v29  ;;  %2485 = vmatpush1.bf16.msra.mxu1 %v3689_v30  ;;  %v283_v29 = vrot.slane %v4067_v24, %v282_v26 }
  0xfd   :  { %2404 = vmatprep.subr.bf16.mxu0 %v3694_v31  ;;  %2486 = vmatprep.subr.bf16.mxu1 %v3697_v32 }
 0x100   :  { %2405 = vmatpush1.bf16.msra.mxu0 %v3692_v33  ;;  %2487 = vmatpush1.bf16.msra.mxu1 %v3695_v34 }
 0x101   :  { %2406 = vmatprep.subr.bf16.mxu0 %v3700_v35  ;;  %2488 = vmatprep.subr.bf16.mxu1 %v3703_v36 }
 0x104   :  { %2407 = vmatpush1.bf16.msra.mxu0 %v3698_v37  ;;  %2489 = vmatpush1.bf16.msra.mxu1 %v3701_v38 }
 0x105   :  { %2408 = vmatprep.subr.bf16.mxu0 %v3706_v39  ;;  %2490 = vmatprep.subr.bf16.mxu1 %v3709_v40 }
 0x108   :  { %2409 = vmatpush1.bf16.msra.mxu0 %v3704_v41  ;;  %2491 = vmatpush1.bf16.msra.mxu1 %v3707_v42 }
 0x109   :  { %2410 = vmatprep.subr.bf16.mxu0 %v3712_v43  ;;  %2492 = vmatprep.subr.bf16.mxu1 %v3715_v44 }
 0x10c   :  { %2411 = vmatpush1.bf16.msra.mxu0 %v3710_v45  ;;  %2493 = vmatpush1.bf16.msra.mxu1 %v3713_v46  ;;  %v3770_v45 = vld [vmem:[#allocation5 + $0x200] ss:$16 sps:$4 sm:$0xff]   ;;  %v3773_v46 = vld [vmem:[#allocation5 + $0x208] ss:$16 sps:$4 sm:$0xff]  }
 0x10d   :  { %2412 = vmatprep.subr.bf16.mxu0 %v3718_v47  ;;  %2494 = vmatprep.subr.bf16.mxu1 %v3721_v48  ;;  %v3778_v48 = vld [vmem:[#allocation5 + $0x224] ss:$16 sps:$4 sm:$0xff]  }
 0x110   :  { %2413 = vmatpush1.bf16.msra.mxu0 %v3716_v49  ;;  %2495 = vmatpush1.bf16.msra.mxu1 %v3719_v50  ;;  %v3781_v49 = vld [vmem:[#allocation5 + $0x22c] ss:$16 sps:$4 sm:$0xff]  }
 0x111   :  { %2414 = vmatprep.subr.bf16.mxu0 %v3724_v51  ;;  %2496 = vmatprep.subr.bf16.mxu1 %v3727_v52  ;;  %v3776_v51 = vld [vmem:[#allocation5 + $0x220] ss:$16 sps:$4 sm:$0xff]   ;;  %v3779_v52 = vld [vmem:[#allocation5 + $0x228] ss:$16 sps:$4 sm:$0xff]  }
 0x114   :  { %2415 = vmatpush1.bf16.msra.mxu0 %v3722_v53  ;;  %2497 = vmatpush1.bf16.msra.mxu1 %v3725_v54  ;;  %v3784_v53 = vld [vmem:[#allocation5 + $0x244] ss:$16 sps:$4 sm:$0xff]   ;;  %v3787_v54 = vld [vmem:[#allocation5 + $0x24c] ss:$16 sps:$4 sm:$0xff]  }
 0x115   :  { %2416 = vmatprep.subr.bf16.mxu0 %v3730_v55  ;;  %2498 = vmatprep.subr.bf16.mxu1 %v3733_v56  ;;  %v3782_v55 = vld [vmem:[#allocation5 + $0x240] ss:$16 sps:$4 sm:$0xff]   ;;  %v3785_v56 = vld [vmem:[#allocation5 + $0x248] ss:$16 sps:$4 sm:$0xff]  }
 0x118   :  { %2417 = vmatpush1.bf16.msra.mxu0 %v3728_v57  ;;  %2499 = vmatpush1.bf16.msra.mxu1 %v3731_v58  ;;  %v3790_v57 = vld [vmem:[#allocation5 + $0x264] ss:$16 sps:$4 sm:$0xff]   ;;  %v3793_v58 = vld [vmem:[#allocation5 + $0x26c] ss:$16 sps:$4 sm:$0xff]  }
 0x119   :  { %2418 = vmatprep.subr.bf16.mxu0 %v3736_v59  ;;  %2500 = vmatprep.subr.bf16.mxu1 %v3739_v60  ;;  %v3788_v59 = vld [vmem:[#allocation5 + $0x260] ss:$16 sps:$4 sm:$0xff]   ;;  %v3791_v60 = vld [vmem:[#allocation5 + $0x268] ss:$16 sps:$4 sm:$0xff]  }
 0x11c   :  { %2419 = vmatpush1.bf16.msra.mxu0 %v3734_v61  ;;  %2501 = vmatpush1.bf16.msra.mxu1 %v3737_v62  ;;  %v3796_v61 = vld [vmem:[#allocation5 + $0x284] ss:$16 sps:$4 sm:$0xff]   ;;  %v3799_v62 = vld [vmem:[#allocation5 + $0x28c] ss:$16 sps:$4 sm:$0xff]  }
 0x11d   :  { %2420 = vmatprep.subr.bf16.mxu0 %v3742_v63  ;;  %2502 = vmatprep.subr.bf16.mxu1 %v3745_v0  ;;  %v3794_v63 = vld [vmem:[#allocation5 + $0x280] ss:$16 sps:$4 sm:$0xff]   ;;  %v3797_v0 = vld [vmem:[#allocation5 + $0x288] ss:$16 sps:$4 sm:$0xff]  }
 0x120   :  { %2421 = vmatpush1.bf16.msra.mxu0 %v3740_v1  ;;  %2503 = vmatpush1.bf16.msra.mxu1 %v3743_v2  ;;  %v3802_v1 = vld [vmem:[#allocation5 + $0x2a4] ss:$16 sps:$4 sm:$0xff]   ;;  %v3805_v2 = vld [vmem:[#allocation5 + $0x2ac] ss:$16 sps:$4 sm:$0xff]  }
 0x121   :  { %2422 = vmatprep.subr.bf16.mxu0 %v3748_v3  ;;  %2504 = vmatprep.subr.bf16.mxu1 %v3751_v4  ;;  %v3800_v3 = vld [vmem:[#allocation5 + $0x2a0] ss:$16 sps:$4 sm:$0xff]   ;;  %v3803_v4 = vld [vmem:[#allocation5 + $0x2a8] ss:$16 sps:$4 sm:$0xff]  }
 0x124   :  { %2423 = vmatpush1.bf16.msra.mxu0 %v3746_v5  ;;  %2505 = vmatpush1.bf16.msra.mxu1 %v3749_v6  ;;  %v3808_v5 = vld [vmem:[#allocation5 + $0x2c4] ss:$16 sps:$4 sm:$0xff]   ;;  %v3811_v6 = vld [vmem:[#allocation5 + $0x2cc] ss:$16 sps:$4 sm:$0xff]  }
 0x125   :  { %2424 = vmatprep.subr.bf16.mxu0 %v3754_v7  ;;  %2506 = vmatprep.subr.bf16.mxu1 %v3757_v8  ;;  %v3806_v7 = vld [vmem:[#allocation5 + $0x2c0] ss:$16 sps:$4 sm:$0xff]   ;;  %v3809_v8 = vld [vmem:[#allocation5 + $0x2c8] ss:$16 sps:$4 sm:$0xff]  }
 0x128   :  { %2425 = vmatpush1.bf16.msra.mxu0 %v3752_v9  ;;  %2507 = vmatpush1.bf16.msra.mxu1 %v3755_v10  ;;  %v3814_v9 = vld [vmem:[#allocation5 + $0x2e4] ss:$16 sps:$4 sm:$0xff]   ;;  %v3817_v10 = vld [vmem:[#allocation5 + $0x2ec] ss:$16 sps:$4 sm:$0xff]  }
 0x129   :  { %2426 = vmatprep.subr.bf16.mxu0 %v3760_v11  ;;  %2508 = vmatprep.subr.bf16.mxu1 %v3763_v12  ;;  %v3812_v11 = vld [vmem:[#allocation5 + $0x2e0] ss:$16 sps:$4 sm:$0xff]   ;;  %v3815_v12 = vld [vmem:[#allocation5 + $0x2e8] ss:$16 sps:$4 sm:$0xff]  }
 0x12c   :  { %2427 = vmatpush1.bf16.msra.mxu0 %v3758_v13  ;;  %2509 = vmatpush1.bf16.msra.mxu1 %v3761_v14  ;;  %v3820_v13 = vld [vmem:[#allocation5 + $0x304] ss:$16 sps:$4 sm:$0xff]   ;;  %v3823_v14 = vld [vmem:[#allocation5 + $0x30c] ss:$16 sps:$4 sm:$0xff]  }
 0x12d   :  { %2428 = vmatprep.subr.bf16.mxu0 %v3766_v15  ;;  %2510 = vmatprep.subr.bf16.mxu1 %v3769_v16  ;;  %v3818_v15 = vld [vmem:[#allocation5 + $0x300] ss:$16 sps:$4 sm:$0xff]   ;;  %v3821_v16 = vld [vmem:[#allocation5 + $0x308] ss:$16 sps:$4 sm:$0xff]  }
 0x130   :  { %2429 = vmatpush1.bf16.msra.mxu0 %v3764_v17  ;;  %2511 = vmatpush1.bf16.msra.mxu1 %v3767_v18  ;;  %v3826_v17 = vld [vmem:[#allocation5 + $0x324] ss:$16 sps:$4 sm:$0xff]   ;;  %v3829_v18 = vld [vmem:[#allocation5 + $0x32c] ss:$16 sps:$4 sm:$0xff]  }
 0x131   :  { %2439 = vmatprep.subr.bf16.mxu0 %v3772_v19  ;;  %2521 = vmatprep.subr.bf16.mxu1 %v3775_v20  ;;  %v3824_v19 = vld [vmem:[#allocation5 + $0x320] ss:$16 sps:$4 sm:$0xff]   ;;  %v3827_v20 = vld [vmem:[#allocation5 + $0x328] ss:$16 sps:$4 sm:$0xff]  }
 0x1c6   :  { %v1429_v30 = vpop.f32.mrb[0].mxu0  ;;  %v4080_v31 = vpop.f32.mrb[0].mxu1 }
 0x1c7   :  { %v3334_v32 = vadd.f32 %v1429_v30, %v271_v27  ;;  %v1431_v33 = vpop.f32.mrb[1].mxu0  ;;  %v1595_v34 = vpop.f32.mrb[1].mxu1  ;;  %v3835_v27 = vld [vmem:[#allocation5 + $0x34c] ss:$16 sps:$4 sm:$0xff]   ;;  %v3838_v30 = vld [vmem:[#allocation5 + $0x364] ss:$16 sps:$4 sm:$0xff]  }
 0x1c8   :  { %v3335_v35 = vadd.f32 %v1431_v33, %v275_v28  ;;  %v3337_v36 = vadd.f32 %v1595_v34, %v283_v29  ;;  %v1433_v37 = vpop.f32.mrb[2].mxu0  ;;  %v1597_v38 = vpop.f32.mrb[2].mxu1  ;;  %v3830_v28 = vld [vmem:[#allocation5 + $0x340] ss:$16 sps:$4 sm:$0xff]   ;;  %v3833_v29 = vld [vmem:[#allocation5 + $0x348] ss:$16 sps:$4 sm:$0xff]  }
 0x1c9   :  { %v1600_v39 = vmax.f32 %v3334_v32, 0.0  ;;  %v1434_v40 = vpop.f32.mrb[3].mxu0  ;;  %v1598_v41 = vpop.f32.mrb[3].mxu1  ;;  %v3841_v32 = vld [vmem:[#allocation5 + $0x36c] ss:$16 sps:$4 sm:$0xff]  }
 0x1ca   :  { %v1601_v42 = vmax.f32 %v3335_v35, 0.0  ;;  %v1603_v43 = vmax.f32 %v3337_v36, 0.0  ;;  %v3836_v33 = vld [vmem:[#allocation5 + $0x360] ss:$16 sps:$4 sm:$0xff]   ;;  %v3839_v34 = vld [vmem:[#allocation5 + $0x368] ss:$16 sps:$4 sm:$0xff]  }
 0x1cb   :  { %v1604_v47 = vpack.c.bf16 %v1600_v39, %v1600_v39  ;;  %v3844_v35 = vld [vmem:[#allocation5 + $0x384] ss:$16 sps:$4 sm:$0xff]   ;;  %v3847_v36 = vld [vmem:[#allocation5 + $0x38c] ss:$16 sps:$4 sm:$0xff]   ;;  %v3842_v37 = vld [vmem:[#allocation5 + $0x380] ss:$16 sps:$4 sm:$0xff]  }
 0x1cc   :  { %v1605_v44 = vpack.c.bf16 %v1601_v42, %v1601_v42  ;;  %v1607_v50 = vpack.c.bf16 %v1603_v43, %v1603_v43  ;;  %v3845_v38 = vld [vmem:[#allocation5 + $0x388] ss:$16 sps:$4 sm:$0xff]   ;;  %v278_v39 = vsub.s32 2, %v4061_v22  ;;  %v3850_v40 = vld [vmem:[#allocation5 + $0x3a4] ss:$16 sps:$4 sm:$0xff]  }
 0x1cd   :  { %v3853_v41 = vld [vmem:[#allocation5 + $0x3ac] ss:$16 sps:$4 sm:$0xff]   ;;  %v3848_v42 = vld [vmem:[#allocation5 + $0x3a0] ss:$16 sps:$4 sm:$0xff]   ;;  %v3851_v43 = vld [vmem:[#allocation5 + $0x3a8] ss:$16 sps:$4 sm:$0xff]  }
 0x1ce   :  { %2430 = vmatprep.mubr.bf16.mxu0 %v1605_v44  ;;  %2512 = vmatprep.mubr.bf16.mxu1 %v1605_v44  ;;  %v279_v44 = vrot.slane %v4067_v24, %v278_v39  ;;  %v3866_v24 = vld [vmem:[%s4214_s5 + $0x40] sm:$0xff]  }
 0x1cf   :  { %2431 = vmatmul.mubr.bf16.vlgmr.msra.gmra.mrb[4].mxu0 %v1604_v47  ;;  %2513 = vmatmul.mubr.bf16.vlgmr.msra.gmra.mrb[4].mxu1 %v1604_v47  ;;  %v3854_v47 = vld [vmem:[#allocation5 + $0x3c0] ss:$16 sps:$4 sm:$0xff]  }
 0x1d0   :  { %2440 = vmatpush1.bf16.msra.mxu0 %v3770_v45  ;;  %2522 = vmatpush1.bf16.msra.mxu1 %v3773_v46  ;;  %v3856_v45 = vld [vmem:[#allocation5 + $0x3c4] ss:$16 sps:$4 sm:$0xff]   ;;  %v3859_v46 = vld [vmem:[#allocation5 + $0x3cc] ss:$16 sps:$4 sm:$0xff]  }
 0x1d1   :  { %2471 = vmatprep.mubr.bf16.mxu0 %v1607_v50  ;;  %2553 = vmatprep.mubr.bf16.mxu1 %v1607_v50  ;;  %v3862_v50 = vld [vmem:[#allocation5 + $0x3e4] ss:$16 sps:$4 sm:$0xff]  }
 0x1d2   :  { %2441 = vmatprep.subr.bf16.mxu0 %v3778_v48  ;;  %2523 = vmatprep.subr.bf16.mxu1 %v3781_v49  ;;  %v3857_v48 = vld [vmem:[#allocation5 + $0x3c8] ss:$16 sps:$4 sm:$0xff]   ;;  %v3336_v49 = vadd.f32 %v4080_v31, %v279_v44  ;;  %v3868_v31 = vld [vmem:[%s4214_s5] sm:$0xff]  }
 0x1d4   :  { %2442 = vmatpush1.bf16.msra.mxu0 %v3776_v51  ;;  %2524 = vmatpush1.bf16.msra.mxu1 %v3779_v52  ;;  %v3865_v51 = vld [vmem:[#allocation5 + $0x3ec] ss:$16 sps:$4 sm:$0xff]   ;;  %v3860_v52 = vld [vmem:[#allocation5 + $0x3e0] ss:$16 sps:$4 sm:$0xff]  }
 0x1d5   :  { %2443 = vmatprep.subr.bf16.mxu0 %v3784_v53  ;;  %2525 = vmatprep.subr.bf16.mxu1 %v3787_v54  ;;  %v3863_v53 = vld [vmem:[#allocation5 + $0x3e8] ss:$16 sps:$4 sm:$0xff]   ;;  %v1602_v54 = vmax.f32 %v3336_v49, 0.0 }
 0x1d8   :  { %2444 = vmatpush1.bf16.msra.mxu0 %v3782_v55  ;;  %2526 = vmatpush1.bf16.msra.mxu1 %v3785_v56  ;;  %v3867_v55 = vld [vmem:[%s4214_s5 + $0xc0] sm:$0xff]  }
 0x1d9   :  { %2445 = vmatprep.subr.bf16.mxu0 %v3790_v57  ;;  %2527 = vmatprep.subr.bf16.mxu1 %v3793_v58  ;;  %v3869_v56 = vld [vmem:[%s4214_s5 + $0x80] sm:$0xff]   ;;  %v1606_v57 = vpack.c.bf16 %v1602_v54, %v1602_v54  ;;  %v3870_v58 = vld [vmem:[%s4214_s5 + $0x48] sm:$0xff]  }
 0x1dc   :  { %2446 = vmatpush1.bf16.msra.mxu0 %v3788_v59  ;;  %2528 = vmatpush1.bf16.msra.mxu1 %v3791_v60  ;;  %v3871_v59 = vld [vmem:[%s4214_s5 + $0xc8] sm:$0xff]  }
 0x1dd   :  { %2447 = vmatprep.subr.bf16.mxu0 %v3796_v61  ;;  %2529 = vmatprep.subr.bf16.mxu1 %v3799_v62  ;;  %v3872_v60 = vld [vmem:[%s4214_s5 + $0x8] sm:$0xff]   ;;  %v3874_v62 = vld [vmem:[%s4214_s5 + $0x50] sm:$0xff]  }
 0x1de   :  { %v3873_v61 = vld [vmem:[%s4214_s5 + $0x88] sm:$0xff]  }
 0x1e0   :  { %2448 = vmatpush1.bf16.msra.mxu0 %v3794_v63  ;;  %2530 = vmatpush1.bf16.msra.mxu1 %v3797_v0  ;;  %v3875_v63 = vld [vmem:[%s4214_s5 + $0xd0] sm:$0xff]  }
 0x1e1   :  { %2449 = vmatprep.subr.bf16.mxu0 %v3802_v1  ;;  %2531 = vmatprep.subr.bf16.mxu1 %v3805_v2  ;;  %v3876_v0 = vld [vmem:[%s4214_s5 + $0x10] sm:$0xff]   ;;  %v3878_v2 = vld [vmem:[%s4214_s5 + $0x58] sm:$0xff]  }
 0x1e2   :  { %v3877_v1 = vld [vmem:[%s4214_s5 + $0x90] sm:$0xff]  }
 0x1e4   :  { %2450 = vmatpush1.bf16.msra.mxu0 %v3800_v3  ;;  %2532 = vmatpush1.bf16.msra.mxu1 %v3803_v4  ;;  %v3879_v3 = vld [vmem:[%s4214_s5 + $0xd8] sm:$0xff]  }
 0x1e5   :  { %2451 = vmatprep.subr.bf16.mxu0 %v3808_v5  ;;  %2533 = vmatprep.subr.bf16.mxu1 %v3811_v6  ;;  %v3880_v4 = vld [vmem:[%s4214_s5 + $0x18] sm:$0xff]   ;;  %v3882_v6 = vld [vmem:[%s4214_s5 + $0x60] sm:$0xff]  }
 0x1e6   :  { %v3881_v5 = vld [vmem:[%s4214_s5 + $0x98] sm:$0xff]  }
 0x1e8   :  { %2452 = vmatpush1.bf16.msra.mxu0 %v3806_v7  ;;  %2534 = vmatpush1.bf16.msra.mxu1 %v3809_v8  ;;  %v3883_v7 = vld [vmem:[%s4214_s5 + $0xe0] sm:$0xff]  }
 0x1e9   :  { %2453 = vmatprep.subr.bf16.mxu0 %v3814_v9  ;;  %2535 = vmatprep.subr.bf16.mxu1 %v3817_v10  ;;  %v3884_v8 = vld [vmem:[%s4214_s5 + $0x20] sm:$0xff]   ;;  %v3886_v10 = vld [vmem:[%s4214_s5 + $0x68] sm:$0xff]  }
 0x1ea   :  { %v3885_v9 = vld [vmem:[%s4214_s5 + $0xa0] sm:$0xff]  }
 0x1ec   :  { %2454 = vmatpush1.bf16.msra.mxu0 %v3812_v11  ;;  %2536 = vmatpush1.bf16.msra.mxu1 %v3815_v12  ;;  %v3887_v11 = vld [vmem:[%s4214_s5 + $0xe8] sm:$0xff]  }
 0x1ed   :  { %2455 = vmatprep.subr.bf16.mxu0 %v3820_v13  ;;  %2537 = vmatprep.subr.bf16.mxu1 %v3823_v14  ;;  %v3888_v12 = vld [vmem:[%s4214_s5 + $0x28] sm:$0xff]   ;;  %v3890_v14 = vld [vmem:[%s4214_s5 + $0x70] sm:$0xff]  }
 0x1ee   :  { %v3889_v13 = vld [vmem:[%s4214_s5 + $0xa8] sm:$0xff]  }
 0x1f0   :  { %2456 = vmatpush1.bf16.msra.mxu0 %v3818_v15  ;;  %2538 = vmatpush1.bf16.msra.mxu1 %v3821_v16  ;;  %v3891_v15 = vld [vmem:[%s4214_s5 + $0xf0] sm:$0xff]  }
 0x1f1   :  { %2457 = vmatprep.subr.bf16.mxu0 %v3826_v17  ;;  %2539 = vmatprep.subr.bf16.mxu1 %v3829_v18  ;;  %v3892_v16 = vld [vmem:[%s4214_s5 + $0x30] sm:$0xff]   ;;  %v3894_v18 = vld [vmem:[%s4214_s5 + $0x78] sm:$0xff]  }
 0x1f2   :  { %v3893_v17 = vld [vmem:[%s4214_s5 + $0xb0] sm:$0xff]  }
 0x1f4   :  { %2458 = vmatpush1.bf16.msra.mxu0 %v3824_v19  ;;  %2540 = vmatpush1.bf16.msra.mxu1 %v3827_v20  ;;  %v3895_v19 = vld [vmem:[%s4214_s5 + $0xf8] sm:$0xff]  }
 0x1f5   :  { %2459 = vmatprep.subr.bf16.mxu0 %v3832_v21  ;;  %2541 = vmatprep.subr.bf16.mxu1 %v3835_v27  ;;  %v3896_v20 = vld [vmem:[%s4214_s5 + $0x38] sm:$0xff]   ;;  %v1736_v27 = vld [vmem:[%s4213_s4] sm:$0xf] }
 0x1f6   :  { %v3897_v21 = vld [vmem:[%s4214_s5 + $0xb8] sm:$0xff]  }
 0x1f8   :  { %2460 = vmatpush1.bf16.msra.mxu0 %v3830_v28  ;;  %2542 = vmatpush1.bf16.msra.mxu1 %v3833_v29  ;;  %v1741_v28 = vrot.slane %v1736_v27, %v270_v23  ;;  %v1749_v29 = vrot.slane %v1736_v27, %v278_v39 }
 0x1f9   :  { %2461 = vmatprep.subr.bf16.mxu0 %v3838_v30  ;;  %2543 = vmatprep.subr.bf16.mxu1 %v3841_v32  ;;  %v1745_v30 = vrot.slane %v1736_v27, %v274_v25  ;;  %v1753_v32 = vrot.slane %v1736_v27, %v282_v26 }
 0x1fc   :  { %2462 = vmatpush1.bf16.msra.mxu0 %v3836_v33  ;;  %2544 = vmatpush1.bf16.msra.mxu1 %v3839_v34 }
 0x1fd   :  { %2463 = vmatprep.subr.bf16.mxu0 %v3844_v35  ;;  %2545 = vmatprep.subr.bf16.mxu1 %v3847_v36 }
 0x200   :  { %2464 = vmatpush1.bf16.msra.mxu0 %v3842_v37  ;;  %2546 = vmatpush1.bf16.msra.mxu1 %v3845_v38 }
 0x201   :  { %2465 = vmatprep.subr.bf16.mxu0 %v3850_v40  ;;  %2547 = vmatprep.subr.bf16.mxu1 %v3853_v41 }
 0x204   :  { %2466 = vmatpush1.bf16.msra.mxu0 %v3848_v42  ;;  %2548 = vmatpush1.bf16.msra.mxu1 %v3851_v43 }
 0x205   :  { %2467 = vmatprep.subr.bf16.mxu0 %v3856_v45  ;;  %2549 = vmatprep.subr.bf16.mxu1 %v3859_v46 }
 0x208   :  { %2468 = vmatpush1.bf16.msra.mxu0 %v3854_v47  ;;  %2550 = vmatpush1.bf16.msra.mxu1 %v3857_v48 }
 0x209   :  { %2469 = vmatprep.subr.bf16.mxu0 %v3862_v50  ;;  %2551 = vmatprep.subr.bf16.mxu1 %v3865_v51  ;;  %v3257_v51 = vld [vmem:[%s4215_s6] ss:$0 sm:$0xff] }
 0x20c   :  { %2470 = vmatpush1.bf16.msra.mxu0 %v3860_v52  ;;  %2552 = vmatpush1.bf16.msra.mxu1 %v3863_v53 }
 0x20d   :  { %3290 = vmatprep.subr.bf16.mxu0 %v3866_v24  ;;  %3312 = vmatprep.subr.bf16.mxu1 %v3867_v55 }
 0x20f   :  { %2472 = vmatmul.mubr.bf16.vlgmr.msra.gmra.mrb[4].mxu0 %v1606_v57  ;;  %2554 = vmatmul.mubr.bf16.vlgmr.msra.gmra.mrb[4].mxu1 %v1606_v57 }
 0x210   :  { %3291 = vmatpush3.bf16.msra.mxu0 %v3868_v31  ;;  %3313 = vmatpush3.bf16.msra.mxu1 %v3869_v56 }
 0x211   :  { %3292 = vmatprep.subr.bf16.mxu0 %v3870_v58  ;;  %3314 = vmatprep.subr.bf16.mxu1 %v3871_v59 }
 0x214   :  { %3293 = vmatpush3.bf16.msra.mxu0 %v3872_v60  ;;  %3315 = vmatpush3.bf16.msra.mxu1 %v3873_v61 }
 0x215   :  { %3294 = vmatprep.subr.bf16.mxu0 %v3874_v62  ;;  %3316 = vmatprep.subr.bf16.mxu1 %v3875_v63 }
 0x218   :  { %3295 = vmatpush3.bf16.msra.mxu0 %v3876_v0  ;;  %3317 = vmatpush3.bf16.msra.mxu1 %v3877_v1 }
 0x219   :  { %3296 = vmatprep.subr.bf16.mxu0 %v3878_v2  ;;  %3318 = vmatprep.subr.bf16.mxu1 %v3879_v3 }
 0x21c   :  { %3297 = vmatpush3.bf16.msra.mxu0 %v3880_v4  ;;  %3319 = vmatpush3.bf16.msra.mxu1 %v3881_v5 }
 0x21d   :  { %3298 = vmatprep.subr.bf16.mxu0 %v3882_v6  ;;  %3320 = vmatprep.subr.bf16.mxu1 %v3883_v7 }
 0x220   :  { %3299 = vmatpush3.bf16.msra.mxu0 %v3884_v8  ;;  %3321 = vmatpush3.bf16.msra.mxu1 %v3885_v9 }
 0x221   :  { %3300 = vmatprep.subr.bf16.mxu0 %v3886_v10  ;;  %3322 = vmatprep.subr.bf16.mxu1 %v3887_v11 }
 0x224   :  { %3301 = vmatpush3.bf16.msra.mxu0 %v3888_v12  ;;  %3323 = vmatpush3.bf16.msra.mxu1 %v3889_v13 }
 0x225   :  { %3302 = vmatprep.subr.bf16.mxu0 %v3890_v14  ;;  %3324 = vmatprep.subr.bf16.mxu1 %v3891_v15 }
 0x228   :  { %3303 = vmatpush3.bf16.msra.mxu0 %v3892_v16  ;;  %3325 = vmatpush3.bf16.msra.mxu1 %v3893_v17 }
 0x229   :  { %3304 = vmatprep.subr.bf16.mxu0 %v3894_v18  ;;  %3326 = vmatprep.subr.bf16.mxu1 %v3895_v19 }
 0x22c   :  { %3305 = vmatpush3.bf16.msra.mxu0 %v3896_v20  ;;  %3327 = vmatpush3.bf16.msra.mxu1 %v3897_v21 }
 0x2e2   :  { %v2473_v33 = vpop.f32.mrb[4].mxu0  ;;  %v2555_v34 = vpop.f32.mrb[4].mxu1 }
 0x2e3   :  { %v3338_v35 = vadd.f32 %v2473_v33, %v1741_v28  ;;  %v3340_v36 = vadd.f32 %v2555_v34, %v1749_v29  ;;  %v2475_v37 = vpop.f32.mrb[5].mxu0  ;;  %v2557_v38 = vpop.f32.mrb[5].mxu1 }
 0x2e4   :  { %v3339_v40 = vadd.f32 %v2475_v37, %v1745_v30  ;;  %v3341_v41 = vadd.f32 %v2557_v38, %v1753_v32  ;;  %v2477_v42 = vpop.f32.mrb[6].mxu0  ;;  %v2559_v43 = vpop.f32.mrb[6].mxu1 }
 0x2e5   :  { %v2562_v23 = vmax.f32 %v3338_v35, 0.0  ;;  %v2564_v44 = vmax.f32 %v3340_v36, 0.0  ;;  %v2478_v45 = vpop.f32.mrb[7].mxu0  ;;  %v2560_v39 = vpop.f32.mrb[7].mxu1 }
 0x2e6   :  { %v2563_v46 = vmax.f32 %v3339_v40, 0.0  ;;  %v2565_v47 = vmax.f32 %v3341_v41, 0.0 }
 0x2e7   :  { %v2566_v22 = vpack.c.bf16 %v2562_v23, %v2562_v23  ;;  %v2568_v26 = vpack.c.bf16 %v2564_v44, %v2564_v44 }
 0x2e8   :  { %v2567_v25 = vpack.c.bf16 %v2563_v46, %v2563_v46  ;;  %v2569_v48 = vpack.c.bf16 %v2565_v47, %v2565_v47 }
 0x2ea   :  { %2865 = vmatprep.mubr.bf16.mxu0 %v2567_v25  ;;  %2905 = vmatprep.mubr.bf16.mxu1 %v2569_v48 }
 0x2eb   :  { %2866 = vmatmul.mubr.bf16.vlgmr.msra.gmra.mrb[8].mxu0 %v2566_v22  ;;  %2906 = vmatmul.mubr.bf16.vlgmr.msra.gmra.mrb[8].mxu1 %v2568_v26 }
 0x3be   :  { %v3306_v49 = vpop.f32.mrb[8].mxu0  ;;  %v3328_v50 = vpop.f32.mrb[8].mxu1 }
 0x3bf   :  { %v3307_v52 = vpop.f32.mrb[9].mxu0  ;;  %v3329_v53 = vpop.f32.mrb[9].mxu1 }
 0x3c0   :  { %v3308_v54 = vadd.f32 %v3307_v52, %v3306_v49  ;;  %v3330_v24 = vadd.f32 %v3329_v53, %v3328_v50  ;;  %v3309_v55 = vpop.f32.mrb[10].mxu0  ;;  %v3331_v31 = vpop.f32.mrb[10].mxu1 }
 0x3c1   :  { %v3310_v56 = vpop.f32.mrb[11].mxu0  ;;  %v3332_v57 = vpop.f32.mrb[11].mxu1 }
 0x3c2   :  { %v2868_v58 = vadd.f32 %v3308_v54, %v3257_v51 }
 0x3c4   :  { %v2908_v59 = vadd.f32 %v3330_v24, %v2868_v58 }
 0x3c6   :  { %v2913_v60 = vmax.f32 %v2908_v59, 0.0 }
 0x3c8   :  { %2914 = vst [vmem:[#allocation7] sm:$0xff] %v2913_v60 }
 0x3c9   :  { %3953 = shalt.err (!%p3950_p6)
}
 0x3ca   :  { %s3954_s30 = scalar_lea.hbm %s4216_s7, 128 }
 0x3cb   :  { %p3955_p7 = scmp.ne.s32.totalorder %s4216_s7, %s3954_s30  ;;  %p3958_p8 = scmp.lt.u32.totalorder %s3954_s30, %s4216_s7 }
 0x3cd   :  { %p3960_p9 = pnand %p3958_p8, %p3955_p7 }
 0x3cf   :  { %3963 = shalt.err (!%p3960_p9)
}
 0x3d0   :  { %2924 = dma.vmem_to_hbm [thread:$0]  %s2922_s27, 128, %s4216_s7, [#allocation4]  }
 0x3d1   :  { %3968 = dma.done.wait [#allocation4], 128  }
 0x3d2   :  { %3969 = vsyncadd [#allocation4], 4294967168 }
 0x3d3   :  { %2928 = vsyncpa [#allocation3], 1 }
 0x3d4   :  { %2929 = vsyncpa [#allocation6], 1 }
 0x3d5   :  { %2930 = vsyncpa [#allocation4], 1 }

</bundles_post_ra>
